<compile_context>
chip_gen: v5e
topology: v5e:2x2
jax: 0.10.0
libtpu: 0.0.40
codegen_flags: <defaults>
</compile_context>

<pallas_src>
import numpy as np
import jax
import jax.numpy as jnp
from jax import lax
from jax.experimental import pallas as pl
from jax.experimental.pallas import tpu as pltpu


# ---------------------------------------------------------------------------
# Packed small-parameter layout (offsets into a flat (1, PACK_WIDTH) f32 row)
#   [ 0: 4)  b1                      (4,)
#   [ 4:12)  W2^T flattened [in=4, out=2] row-major  -> p[4 + 2k + j] = W2[j, k]
#   [12:14)  b2                      (2,)
#   [14:16)  W3 row [in=2]           -> p[14 + k] = W3[0, k]
#   [16:17)  b3                      (1,)
#   [17:27)  W4 column [out=10]      -> p[17 + j] = W4[j, 0]
#   [27:37)  b4                      (10,)
# ---------------------------------------------------------------------------
PACK_WIDTH = 128
_B1_OFF, _W2_OFF, _B2_OFF, _W3_OFF, _B3_OFF, _W4_OFF, _B4_OFF = 0, 4, 12, 14, 16, 17, 27


def _round_up(x, m):
    return ((x + m - 1) // m) * m


def _pack_small_params(b1, w2, b2, w3, b3, w4, b4):
    flat = jnp.concatenate([
        b1.reshape(-1),        # 4
        w2.T.reshape(-1),      # 8  (W2^T, [in, out] row-major)
        b2.reshape(-1),        # 2
        w3.reshape(-1),        # 2  (W3 is (1, 2))
        b3.reshape(-1),        # 1
        w4.reshape(-1),        # 10 (W4 is (10, 1))
        b4.reshape(-1),        # 10
    ]).astype(jnp.float32)
    flat = jnp.pad(flat, (0, PACK_WIDTH - flat.shape[0]))
    return flat.reshape(1, PACK_WIDTH)


def nn3hidden_kernel(x_ref, w1_ref, p_ref, o_ref):
    x = x_ref[...]            # (TB, 256)  features lane-dense
    w1 = w1_ref[...]          # (4, 256)   out-major / lane-dense
    p = p_ref[...]            # (1, PACK_WIDTH) packed small params

    # ---- layer 1 (256 -> 4): the only MXU matmul; contract the 256 lane axis
    h1 = lax.dot_general(
        x, w1, dimension_numbers=(((1,), (1,)), ((), ())),
        preferred_element_type=jnp.float32)                        # (TB, 4)
    h1 = jnp.maximum(h1 + p[:, _B1_OFF:_B1_OFF + 4], 0.0)

    # ---- layer 2 (4 -> 2): VPU broadcast FMA, unrolled over K=4 (no MXU)
    h2 = p[:, _B2_OFF:_B2_OFF + 2]                                 # (1, 2) bias
    for k in range(4):
        h2 = h2 + h1[:, k:k + 1] * p[:, _W2_OFF + 2 * k:_W2_OFF + 2 * k + 2]
    h2 = jnp.maximum(h2, 0.0)                                      # (TB, 2)

    # ---- layer 3 (2 -> 1): VPU FMA
    h3 = (h2[:, 0:1] * p[:, _W3_OFF:_W3_OFF + 1]
          + h2[:, 1:2] * p[:, _W3_OFF + 1:_W3_OFF + 2]
          + p[:, _B3_OFF:_B3_OFF + 1])
    h3 = jnp.maximum(h3, 0.0)                                      # (TB, 1)

    # ---- layer 4 (1 -> 10): pure outer-product FMA on the VPU
    out = h3 * p[:, _W4_OFF:_W4_OFF + 10] + p[:, _B4_OFF:_B4_OFF + 10]  # (TB, 10)

    # ---- log-softmax over the class axis (dim=1 in the PyTorch module)
    m = jnp.max(out, axis=-1, keepdims=True)
    shifted = out - m
    lse = jnp.log(jnp.sum(jnp.exp(shifted), axis=-1, keepdims=True))
    o_ref[...] = shifted - lse


def nn3hidden_forward(x, params, *, block_b=128):
    """x: (B, 256) f32. params: PyTorch-convention (out, in) weights + biases."""
    (w1, b1, w2, b2, w3, b3, w4, b4) = params
    B = x.shape[0]
    x = x.astype(jnp.float32)

    packed = _pack_small_params(b1, w2, b2, w3, b3, w4, b4)

    # Batch tile: multiple of 8 sublanes, capped at block_b (well under the
    # v7x 64 MiB VMEM budget even double-buffered).
    tb = min(block_b, _round_up(B, 8))
    bp = _round_up(B, tb)
    if bp != B:
        x = jnp.pad(x, ((0, bp - B), (0, 0)))

    cost = pl.CostEstimate(
        flops=2 * bp * 256 * 4 + bp * 64,
        transcendentals=11 * bp,                       # 10 exp + 1 log per row
        bytes_accessed=bp * 256 * 4 + bp * 10 * 4 + (4 * 256 + PACK_WIDTH) * 4,
    )

    out = pl.pallas_call(
        nn3hidden_kernel,
        out_shape=jax.ShapeDtypeStruct((bp, 10), jnp.float32),
        grid=(bp // tb,),
        in_specs=[
            pl.BlockSpec((tb, 256), lambda i: (i, 0)),           # x: tiled over batch
            pl.BlockSpec((4, 256), lambda i: (0, 0)),            # W1: lane-dense, resident
            pl.BlockSpec((1, PACK_WIDTH), lambda i: (0, 0)),     # packed small params
        ],
        out_specs=pl.BlockSpec((tb, 10), lambda i: (i, 0)),
        compiler_params=pltpu.CompilerParams(
            dimension_semantics=("parallel",)),                  # megacore batch sharding
        cost_estimate=cost,
    )(x, w1.astype(jnp.float32), packed)
    return out[:B]


def init_params(key):
    """nn.Linear-style U(-1/sqrt(fan_in), 1/sqrt(fan_in)); weights stored (out, in)."""
    dims = [(256, 4), (4, 2), (2, 1), (1, 10)]
    params = []
    for fan_in, fan_out in dims:
        kw, kb, key = jax.random.split(key, 3)
        bound = 1.0 / np.sqrt(fan_in)
        w = jax.random.uniform(kw, (fan_out, fan_in), jnp.float32, -bound, bound)
        b = jax.random.uniform(kb, (fan_out,), jnp.float32, -bound, bound)
        params.extend([w, b])
    return tuple(params)


def reference_forward(x, params):
    (w1, b1, w2, b2, w3, b3, w4, b4) = params
    hp = lax.Precision.HIGHEST
    h1 = jnp.maximum(x @ w1.T + b1, 0.0)
    h2 = jnp.maximum(jnp.dot(h1, w2.T, precision=hp) + b2, 0.0)
    h3 = jnp.maximum(jnp.dot(h2, w3.T, precision=hp) + b3, 0.0)
    out = jnp.dot(h3, w4.T, precision=hp) + b4
    return jax.nn.log_softmax(out, axis=1)


if __name__ == "__main__":
    key = jax.random.PRNGKey(0)
    kx, kp = jax.random.split(key)

    B = 256  # two batch tiles of 128 -> exercises the grid + megacore sharding
    x = jax.random.normal(kx, (B, 256), dtype=jnp.float32)
    params = init_params(kp)

    y = jax.block_until_ready(nn3hidden_forward(x, params))

    y_ref = reference_forward(x, params)
    np.testing.assert_allclose(np.asarray(y), np.asarray(y_ref),
                               rtol=1e-4, atol=1e-4)

    print("KERNEL_OK")
</pallas_src>

<mosaic_0001>
module attributes {stable_mosaic.version = 11 : i64} {
  func.func @nn3hidden_kernel(%arg0: i32, %arg1: memref<128x256xf32, #tpu.memory_space<vmem>>, %arg2: memref<4x256xf32, #tpu.memory_space<vmem>>, %arg3: memref<1x128xf32, #tpu.memory_space<vmem>>, %arg4: memref<128x10xf32, #tpu.memory_space<vmem>>) attributes {dimension_semantics = [#tpu.dimension_semantics<parallel>], iteration_bounds = array<i64: 2>, scalar_prefetch = 0 : i64, scratch_operands = 0 : i64, tpu.core_type = #tpu.core_type<tc>, window_params = [{transform_indices = @transform_0, window_bounds = array<i64: 128, 256>}, {pipeline_mode = #tpu.pipeline_mode<synchronous>, transform_indices = @transform_1, window_bounds = array<i64: 4, 256>}, {pipeline_mode = #tpu.pipeline_mode<synchronous>, transform_indices = @transform_2, window_bounds = array<i64: 1, 128>}, {transform_indices = @transform_3, window_bounds = array<i64: 128, 10>}]} {
    %c0 = arith.constant 0 : index
    %c0_0 = arith.constant 0 : index
    %0 = vector.load %arg1[%c0, %c0_0] : memref<128x256xf32, #tpu.memory_space<vmem>>, vector<128x256xf32>
    %c0_1 = arith.constant 0 : index
    %c0_2 = arith.constant 0 : index
    %1 = vector.load %arg2[%c0_1, %c0_2] : memref<4x256xf32, #tpu.memory_space<vmem>>, vector<4x256xf32>
    %c0_3 = arith.constant 0 : index
    %c0_4 = arith.constant 0 : index
    %2 = vector.load %arg3[%c0_3, %c0_4] : memref<1x128xf32, #tpu.memory_space<vmem>>, vector<1x128xf32>
    %cst = arith.constant dense<0.000000e+00> : vector<128x4xf32>
    %3 = tpu.matmul %0, %1, %cst {dimension_numbers = #tpu.dot_dimension_numbers<[1], [1], [0], [0], [0, 0, 1, 0], [], []>} : vector<128x256xf32>, vector<4x256xf32>, vector<128x4xf32> -> vector<128x4xf32>
    %4 = vector.extract_strided_slice %2 {offsets = [0, 0], sizes = [1, 4], strides = [1, 1]} : vector<1x128xf32> to vector<1x4xf32>
    %5 = vector.broadcast %4 : vector<1x4xf32> to vector<128x4xf32>
    %6 = arith.addf %3, %5 : vector<128x4xf32>
    %cst_5 = arith.constant 0.000000e+00 : f32
    %7 = vector.broadcast %cst_5 : f32 to vector<128x4xf32>
    %8 = arith.maximumf %6, %7 : vector<128x4xf32>
    %9 = vector.extract_strided_slice %2 {offsets = [0, 12], sizes = [1, 2], strides = [1, 1]} : vector<1x128xf32> to vector<1x2xf32>
    %10 = vector.extract_strided_slice %8 {offsets = [0, 0], sizes = [128, 1], strides = [1, 1]} : vector<128x4xf32> to vector<128x1xf32>
    %11 = vector.extract_strided_slice %2 {offsets = [0, 4], sizes = [1, 2], strides = [1, 1]} : vector<1x128xf32> to vector<1x2xf32>
    %12 = vector.broadcast %10 : vector<128x1xf32> to vector<128x2xf32>
    %13 = vector.broadcast %11 : vector<1x2xf32> to vector<128x2xf32>
    %14 = arith.mulf %12, %13 : vector<128x2xf32>
    %15 = vector.broadcast %9 : vector<1x2xf32> to vector<128x2xf32>
    %16 = arith.addf %15, %14 : vector<128x2xf32>
    %17 = vector.extract_strided_slice %8 {offsets = [0, 1], sizes = [128, 1], strides = [1, 1]} : vector<128x4xf32> to vector<128x1xf32>
    %18 = vector.extract_strided_slice %2 {offsets = [0, 6], sizes = [1, 2], strides = [1, 1]} : vector<1x128xf32> to vector<1x2xf32>
    %19 = vector.broadcast %17 : vector<128x1xf32> to vector<128x2xf32>
    %20 = vector.broadcast %18 : vector<1x2xf32> to vector<128x2xf32>
    %21 = arith.mulf %19, %20 : vector<128x2xf32>
    %22 = arith.addf %16, %21 : vector<128x2xf32>
    %23 = vector.extract_strided_slice %8 {offsets = [0, 2], sizes = [128, 1], strides = [1, 1]} : vector<128x4xf32> to vector<128x1xf32>
    %24 = vector.extract_strided_slice %2 {offsets = [0, 8], sizes = [1, 2], strides = [1, 1]} : vector<1x128xf32> to vector<1x2xf32>
    %25 = vector.broadcast %23 : vector<128x1xf32> to vector<128x2xf32>
    %26 = vector.broadcast %24 : vector<1x2xf32> to vector<128x2xf32>
    %27 = arith.mulf %25, %26 : vector<128x2xf32>
    %28 = arith.addf %22, %27 : vector<128x2xf32>
    %29 = vector.extract_strided_slice %8 {offsets = [0, 3], sizes = [128, 1], strides = [1, 1]} : vector<128x4xf32> to vector<128x1xf32>
    %30 = vector.extract_strided_slice %2 {offsets = [0, 10], sizes = [1, 2], strides = [1, 1]} : vector<1x128xf32> to vector<1x2xf32>
    %31 = vector.broadcast %29 : vector<128x1xf32> to vector<128x2xf32>
    %32 = vector.broadcast %30 : vector<1x2xf32> to vector<128x2xf32>
    %33 = arith.mulf %31, %32 : vector<128x2xf32>
    %34 = arith.addf %28, %33 : vector<128x2xf32>
    %cst_6 = arith.constant 0.000000e+00 : f32
    %35 = vector.broadcast %cst_6 : f32 to vector<128x2xf32>
    %36 = arith.maximumf %34, %35 : vector<128x2xf32>
    %37 = vector.extract_strided_slice %36 {offsets = [0, 0], sizes = [128, 1], strides = [1, 1]} : vector<128x2xf32> to vector<128x1xf32>
    %38 = vector.extract_strided_slice %2 {offsets = [0, 14], sizes = [1, 1], strides = [1, 1]} : vector<1x128xf32> to vector<1x1xf32>
    %39 = vector.broadcast %38 : vector<1x1xf32> to vector<128x1xf32>
    %40 = arith.mulf %37, %39 : vector<128x1xf32>
    %41 = vector.extract_strided_slice %36 {offsets = [0, 1], sizes = [128, 1], strides = [1, 1]} : vector<128x2xf32> to vector<128x1xf32>
    %42 = vector.extract_strided_slice %2 {offsets = [0, 15], sizes = [1, 1], strides = [1, 1]} : vector<1x128xf32> to vector<1x1xf32>
    %43 = vector.broadcast %42 : vector<1x1xf32> to vector<128x1xf32>
    %44 = arith.mulf %41, %43 : vector<128x1xf32>
    %45 = arith.addf %40, %44 : vector<128x1xf32>
    %46 = vector.extract_strided_slice %2 {offsets = [0, 16], sizes = [1, 1], strides = [1, 1]} : vector<1x128xf32> to vector<1x1xf32>
    %47 = vector.broadcast %46 : vector<1x1xf32> to vector<128x1xf32>
    %48 = arith.addf %45, %47 : vector<128x1xf32>
    %cst_7 = arith.constant 0.000000e+00 : f32
    %49 = vector.broadcast %cst_7 : f32 to vector<128x1xf32>
    %50 = arith.maximumf %48, %49 : vector<128x1xf32>
    %51 = vector.extract_strided_slice %2 {offsets = [0, 17], sizes = [1, 10], strides = [1, 1]} : vector<1x128xf32> to vector<1x10xf32>
    %52 = vector.broadcast %50 : vector<128x1xf32> to vector<128x10xf32>
    %53 = vector.broadcast %51 : vector<1x10xf32> to vector<128x10xf32>
    %54 = arith.mulf %52, %53 : vector<128x10xf32>
    %55 = vector.extract_strided_slice %2 {offsets = [0, 27], sizes = [1, 10], strides = [1, 1]} : vector<1x128xf32> to vector<1x10xf32>
    %56 = vector.broadcast %55 : vector<1x10xf32> to vector<128x10xf32>
    %57 = arith.addf %54, %56 : vector<128x10xf32>
    %cst_8 = arith.constant dense<0xFF800000> : vector<128xf32>
    %58 = vector.multi_reduction <maximumf>, %57, %cst_8 [1] : vector<128x10xf32> to vector<128xf32>
    %59 = vector.shape_cast %58 : vector<128xf32> to vector<128x1xf32>
    %60 = vector.broadcast %59 : vector<128x1xf32> to vector<128x10xf32>
    %61 = arith.subf %57, %60 : vector<128x10xf32>
    %62 = math.exp %61 : vector<128x10xf32>
    %cst_9 = arith.constant dense<0.000000e+00> : vector<128xf32>
    %63 = vector.multi_reduction <add>, %62, %cst_9 [1] : vector<128x10xf32> to vector<128xf32>
    %64 = vector.shape_cast %63 : vector<128xf32> to vector<128x1xf32>
    %65 = math.log %64 : vector<128x1xf32>
    %66 = vector.broadcast %65 : vector<128x1xf32> to vector<128x10xf32>
    %67 = arith.subf %61, %66 : vector<128x10xf32>
    %c0_10 = arith.constant 0 : index
    %c0_11 = arith.constant 0 : index
    %68 = vector.load %arg4[%c0_10, %c0_11] : memref<128x10xf32, #tpu.memory_space<vmem>>, vector<128x10xf32>
    tpu.vector_store %arg4[%c0_10, %c0_11], %67 {strides = array<i32>} : memref<128x10xf32, #tpu.memory_space<vmem>>, vector<128x10xf32>,
    return
  }
  func.func @transform_0(%arg0: i32) -> (i32, i32) {
    %c0_i32 = arith.constant 0 : i32
    %c0_i32_0 = arith.constant 0 : i32
    return %arg0, %c0_i32 : i32, i32
  }
  func.func @transform_1(%arg0: i32) -> (i32, i32) {
    %c0_i32 = arith.constant 0 : i32
    %c0_i32_0 = arith.constant 0 : i32
    %c0_i32_1 = arith.constant 0 : i32
    return %c0_i32, %c0_i32_0 : i32, i32
  }
  func.func @transform_2(%arg0: i32) -> (i32, i32) {
    %c0_i32 = arith.constant 0 : i32
    %c0_i32_0 = arith.constant 0 : i32
    %c0_i32_1 = arith.constant 0 : i32
    return %c0_i32, %c0_i32_0 : i32, i32
  }
  func.func @transform_3(%arg0: i32) -> (i32, i32) {
    %c0_i32 = arith.constant 0 : i32
    %c0_i32_0 = arith.constant 0 : i32
    return %arg0, %c0_i32 : i32, i32
  }
}

</mosaic_0001>

<bundles_post_ra>
// kernel: tpu_custom_call.1
= control target key start
LH: loop header
LB: loop body
LE: loop exit
PB: predicated region body
PF: predicated region fallthrough
CT: control target
= control target key end

     0   :  { %8 = vsyncpa [#allocation3], 0  ;;  %s3081_s0 = inlined_call_operand.hbm [shape: f32[256,256], index: 0, kind: input, shape index: {}]   ;;  %s3082_s1 = inlined_call_operand.hbm [shape: f32[4,256], index: 1, kind: input, shape index: {}]   ;;  %s3083_s2 = inlined_call_operand.vmem [shape: f32[1,128], index: 2, kind: input, shape index: {}]   ;;  %s3084_s3 = inlined_call_operand.vmem [shape: f32[256,10], index: 3, kind: output, shape index: {}]  }
   0x1   :  { %10 = vsyncpa [#allocation3 + $0x1], 0 }
   0x2   :  { %11 = vsyncpa [#allocation5], 0  ;;  %s2090_s12 = smov 0   ;;  %s2092_s13 = smov 0  }
   0x3   :  { %s2094_s14 = smov 0   ;;  %s2096_s15 = smov 0  }
   0x4 LB: > { %s1736_s16 = sadd.s32 4294967295, %s2051_s15   ;;  %s2110_s17 = sadd.s32 1, %s2051_s15   ;;  %s2051_s15 = sphi %s2096_s15, %s3093_s15   ;;  %s2047_s14 = sphi %s2094_s14, %s3092_s14   ;;  %s2043_s13 = sphi %s2092_s13, %s3091_s13   ;;  %s2039_s12 = sphi %s2090_s12, %s3090_s12  }
   0x5   : > { %s21_s18 = ssub.s32 %s2051_s15, %s2110_s17  ;;  %s24_s19 = sadd.s32 1, %s2047_s14 }
   0x6   : > { %p22_p0 = scmp.eq.s32.totalorder %s21_s18, 0  ;;  %p31_p1 = scmp.ne.s32.totalorder %s2047_s14, %s2043_s13 }
   0x7   : > { %p32_p2 = scmp.eq.s32.totalorder %s2051_s15, 0  ;;  %p37_p3 = scmp.ne.s32.totalorder %s2043_s13, %s2039_s12 }
   0x8   : > { %s2120_s20 = scalar_select %p22_p0, %s2047_s14, %s24_s19  }
   0x9   : > { %p2122_p4 = por %p32_p2, %p31_p1  ;;  %p2128_p5 = scmp.eq.s32.totalorder %s1736_s16, 0 }
   0xa   : > { %p1738_p6 = scmp.ge.s32.totalorder %s2051_s15, 1  ;;  %p116_p7 = scmp.lt.s32.totalorder %s2051_s15, 3 }
   0xb   : > { %p2136_p8 = por %p2128_p5, %p37_p3  ;;  %s128_s27 = sshll.u32 %s3082_s1, 4  ;;  %s129_s27 = int_to_ptr.hbm [resolvable:$true] %s128_s27 }
   0xc   : > { %p2140_p9 = pnand %p1738_p6, %p116_p7  ;;  %s2053_s28 = smov [#allocation4]  }
   0xd   : > { %s130_s29 = sshll.u32 %s2053_s28, 4  ;;  %p1771_p12 = scmp.lt.s32.totalorder %s2051_s15, 2  ;;  %s131_s29 = int_to_ptr.vmem [resolvable:$true] %s130_s29 }
   0xe   : > { %p1762_p10 = pneg %p2140_p9  ;;  %s144_s30 = sand.u32 1, %s2047_s14  }
   0xf   : > { %s1753_s4 = sshll.u32 %s2051_s15, 8  ;;  %p2156_p13 = pnand %p1771_p12, %p2122_p4 }
  0x10   : > { %p1763_p11 = pnand %p1762_p10, %p2128_p5  ;;  %s1741_s6 = sshll.u32 %s144_s30, 8 }
  0x11   : > { %s154_s9 = scalar_lea.hbm %s3081_s0, %s1753_s4  ;;  %s148_s11 = scalar_lea.vmem [#allocation2], %s1741_s6 }
  0x12   : > { %1765 = dma.hbm_to_vmem [thread:$0]  (!%p1763_p11), %s129_s27, 128, %s131_s29, [#allocation5]  }
  0x13   : > { %s155_s10 = sshll.u32 %s154_s9, 4  ;;  %s157_s12 = sshll.u32 %s148_s11, 4  ;;  %s156_s10 = int_to_ptr.hbm [resolvable:$true] %s155_s10  ;;  %s158_s12 = int_to_ptr.vmem [resolvable:$true] %s157_s12 }
  0x14   : > { %s145_s18 = scalar_lea.sflag [#allocation3], %s144_s30  ;;  %s1983_s19 = sshra.s32 %s156_s10, 4  ;;  %s1984_s19 = int_to_ptr.hbm [resolvable:$true] %s1983_s19 }
  0x15   : > { %s1985_s21 = scalar_lea.hbm %s1984_s19, 256  ;;  %p1987_p1 = pneg %p2156_p13 }
  0x16   : > { %p1986_p0 = scmp.ne.s32.totalorder %s1984_s19, %s1985_s21  ;;  %s1990_s27 = scalar_lea.hbm %s3081_s0, 512 }
  0x17   : > { %p1991_p4 = scmp.lt.s32.totalorder %s1984_s19, %s3081_s0  ;;  %p1992_p6 = scmp.lt.s32.totalorder %s1990_s27, %s1985_s21 }
  0x18   : > { %p1988_p2 = pnand %p1987_p1, %p1986_p0 }
  0x19   : > { %p1993_p7 = por %p1992_p6, %p1991_p4 }
  0x1a   : > { %p1989_p3 = pneg %p1988_p2 }
  0x1c   : > { %p1994_p10 = pnand %p1993_p7, %p1989_p3 }
  0x1e   : > { %1997 = shalt.err (!%p1994_p10)
}
  0x1f   : > { %s2054_s30 = smov 256   ;;  %s2055_s4 = smov 16  }
  0x20   : > { %1769 = dma.hbm_to_vmem [thread:$0]  (!%p2156_p13), %s156_s10, 4096, %s158_s12, %s145_s18, %s2054_s30, %s2054_s30, %s2055_s4  }
  0x21   : > { %169 = sbr.rel (%p2140_p9) target bundleno = 1420 (0x58c), region = 32  ;;  %s171_s6 = sand.u32 (!%p2140_p9), 1, %s2043_s13  }
  0x22   : > { %s1746_s7 = sshll.u32 (!%p2140_p9), %s171_s6, 8  ;;  %s172_s8 = scalar_lea.sflag (!%p2140_p9), [#allocation3], %s171_s6 }
  0x23   : > { %s2176_s9 = scalar_lea.vmem (!%p2140_p9), [#allocation2], %s1746_s7 }
  0x26   : > { %2030 = dma.done.wait (%p2136_p8), %s172_s8, 4096  }
  0x27   : > { %2032 = vsyncadd (%p2136_p8), %s172_s8, 4294963200 }
  0x28   : > { %2034 = dma.done.wait (%p2128_p5), [#allocation5], 128  }
  0x29   : > { %2036 = vsyncadd (%p2128_p5), [#allocation5], 4294967168  ;;  %v243_v0 = vld [vmem:[#allocation4] sm:$0xff]  ;;  %v212_v4 = vld [vmem:[%s2176_s9 + $0x8] sm:$0xff]  ;;  %v2056_v29 = vmov 1   ;;  %v2057_v30 = vmov 0  }
  0x2a   : > { %249 = vst [vmem:[#allocation1] ss:$2 sm:$0xff] %v243_v0  ;;  %v211_v3 = vld [vmem:[%s2176_s9] sm:$0xff]  ;;  %v228_v6 = vld [vmem:[%s2176_s9 + $0x88] sm:$0xff]  ;;  %v213_v7 = vld [vmem:[%s2176_s9 + $0x10] sm:$0xff]  ;;  %1823 = vset.pattern.permute.xlu2 %v2056_v29  ;;  %1822 = vset.pattern.permute.xlu0 %v2057_v30  ;;  %v2058_v48 = vmov 2  }
  0x2b   : > { %v227_v5 = vld [vmem:[%s2176_s9 + $0x80] sm:$0xff]  ;;  %v214_v8 = vld [vmem:[%s2176_s9 + $0x18] sm:$0xff]  ;;  %v229_v9 = vld [vmem:[%s2176_s9 + $0x90] sm:$0xff]  ;;  %1837 = vset.pattern.permute.xlu1 %v2057_v30  ;;  %v2059_v57 = vmov 3   ;;  %s2060_s24 = smov 8   ;;  %s2061_s5 = smov 6  }
  0x2c   : > { %v230_v10 = vld [vmem:[%s2176_s9 + $0x98] sm:$0xff]  ;;  %v215_v11 = vld [vmem:[%s2176_s9 + $0x20] sm:$0xff]  ;;  %v216_v12 = vld [vmem:[%s2176_s9 + $0x28] sm:$0xff]  ;;  %s2062_s10 = smov 4   ;;  %s2063_s11 = smov 2   ;;  %vm1321_vm0 = vcmask 220296  }
  0x2d   : > { %v231_v13 = vld [vmem:[%s2176_s9 + $0xa0] sm:$0xff]  ;;  %v232_v14 = vld [vmem:[%s2176_s9 + $0xa8] sm:$0xff]  ;;  %v217_v15 = vld [vmem:[%s2176_s9 + $0x30] sm:$0xff]  ;;  %s2064_s12 = smov 126   ;;  %s2065_s18 = smov 124   ;;  %vm1482_vm1 = vcmask 80896  }
  0x2e   : > { %v218_v16 = vld [vmem:[%s2176_s9 + $0x38] sm:$0xff]  ;;  %v233_v17 = vld [vmem:[%s2176_s9 + $0xb0] sm:$0xff]  ;;  %v219_v19 = vld [vmem:[%s2176_s9 + $0x40] sm:$0xff]  ;;  %s2066_s19 = smov 118   ;;  %s2067_s21 = smov 127  }
  0x2f   : > { %v234_v18 = vld [vmem:[%s2176_s9 + $0xb8] sm:$0xff]  ;;  %v220_v20 = vld [vmem:[%s2176_s9 + $0x48] sm:$0xff]  ;;  %v235_v21 = vld [vmem:[%s2176_s9 + $0xc0] sm:$0xff]  ;;  %s2069_s27 = smov 111   ;;  %s1748_s28 = sshll.u32 %s1736_s16, 4 }
  0x30   : > { %v236_v22 = vld [vmem:[%s2176_s9 + $0xc8] sm:$0xff]  ;;  %v221_v23 = vld [vmem:[%s2176_s9 + $0x50] sm:$0xff]  ;;  %v222_v24 = vld [vmem:[%s2176_s9 + $0x58] sm:$0xff]  ;;  %p206_p5 = scmp.lt.s32.totalorder %s1748_s28, 31 }
  0x31   : > { %v250_v1 = vld.sshfl [vmem:[#allocation1] sm:$0xff pattern:$0x75316420]  ;;  %v251_v2 = vld.sshfl [vmem:[#allocation1 + $0x8] sm:$0xff pattern:$0x75316420] }
  0x32   : > { %269 = vmatpush.xpose.msra.mxu0 %v250_v1  ;;  %334 = vmatpush.xpose.msra.mxu1 %v251_v2  ;;  %v237_v25 = vld [vmem:[%s2176_s9 + $0xd0] sm:$0xff]  ;;  %v238_v26 = vld [vmem:[%s2176_s9 + $0xd8] sm:$0xff]  ;;  %v223_v27 = vld [vmem:[%s2176_s9 + $0x60] sm:$0xff]  ;;  %s3095_s28 = smov (!%p206_p5, %s1748_s28), 31 }
  0x33   : > { %1754 = vmatpush.xpose.msra.mxu2 %v250_v1  ;;  %1755 = vmatpush.xpose.msra.mxu3 %v251_v2  ;;  %v224_v28 = vld [vmem:[%s2176_s9 + $0x68] sm:$0xff]  ;;  %v239_v31 = vld [vmem:[%s2176_s9 + $0xe0] sm:$0xff]  ;;  %v241_v33 = vld [vmem:[%s2176_s9 + $0xf0] sm:$0xff]  ;;  %s1749_s29 = sshll.u32 %s3095_s28, 3 }
  0x34   : > { %v240_v32 = vld [vmem:[%s2176_s9 + $0xe8] sm:$0xff]  ;;  %v242_v34 = vld [vmem:[%s2176_s9 + $0xf8] sm:$0xff]  ;;  %v225_v39 = vld [vmem:[%s2176_s9 + $0x70] sm:$0xff]  ;;  %s3034_s6 = scalar_lea.vmem %s3084_s3, %s1749_s29 }
  0x35   : > { %270 = vmatmul.f32.vlgmr.msra.gmra.mxu0 %v211_v3  ;;  %335 = vmatmul.f32.vlgmr.msra.gmra.mxu1 %v212_v4  ;;  %v2222_v35 = vld [vmem:[%s3083_s2] ss:$0 sm:$0xff] }
  0x36   : > { %294 = vmatmul.f32.vlgmr.msra.gmra.mxu2 %v227_v5  ;;  %359 = vmatmul.f32.vlgmr.msra.gmra.mxu3 %v228_v6  ;;  %v226_v40 = vld [vmem:[%s2176_s9 + $0x78] sm:$0xff] }
  0x3d   : > { %273 = vmatmul.f32.gmra.mxu0 %v213_v7  ;;  %338 = vmatmul.f32.gmra.mxu1 %v214_v8 }
  0x3e   : > { %297 = vmatmul.f32.gmra.mxu2 %v229_v9  ;;  %362 = vmatmul.f32.gmra.mxu3 %v230_v10 }
  0x45   : > { %276 = vmatmul.f32.gmra.mxu0 %v215_v11  ;;  %341 = vmatmul.f32.gmra.mxu1 %v216_v12 }
  0x46   : > { %300 = vmatmul.f32.gmra.mxu2 %v231_v13  ;;  %365 = vmatmul.f32.gmra.mxu3 %v232_v14 }
  0x4d   : > { %279 = vmatmul.f32.gmra.mxu0 %v217_v15  ;;  %344 = vmatmul.f32.gmra.mxu1 %v218_v16 }
  0x4e   : > { %303 = vmatmul.f32.gmra.mxu2 %v233_v17  ;;  %368 = vmatmul.f32.gmra.mxu3 %v234_v18 }
  0x55   : > { %282 = vmatmul.f32.gmra.mxu0 %v219_v19  ;;  %347 = vmatmul.f32.gmra.mxu1 %v220_v20 }
  0x56   : > { %306 = vmatmul.f32.gmra.mxu2 %v235_v21  ;;  %371 = vmatmul.f32.gmra.mxu3 %v236_v22 }
  0x5d   : > { %285 = vmatmul.f32.gmra.mxu0 %v221_v23  ;;  %350 = vmatmul.f32.gmra.mxu1 %v222_v24 }
  0x5e   : > { %309 = vmatmul.f32.gmra.mxu2 %v237_v25  ;;  %374 = vmatmul.f32.gmra.mxu3 %v238_v26 }
  0x65   : > { %288 = vmatmul.f32.gmra.mxu0 %v223_v27  ;;  %353 = vmatmul.f32.gmra.mxu1 %v224_v28 }
  0x66   : > { %312 = vmatmul.f32.gmra.mxu2 %v239_v31  ;;  %377 = vmatmul.f32.gmra.mxu3 %v240_v32 }
  0x6d   : > { %291 = vmatmul.f32.gmra.mxu0 %v225_v39  ;;  %356 = vmatmul.f32.gmra.mxu1 %v226_v40 }
  0x6e   : > { %315 = vmatmul.f32.gmra.mxu2 %v241_v33  ;;  %380 = vmatmul.f32.gmra.mxu3 %v242_v34 }
  0xb2   : > { %v271_v36 = vpop.f32.mrf.mxu0  ;;  %v336_v37 = vpop.f32.mrf.mxu1 }
  0xb3   : > { %v272_v38 = vadd.f32 %v2222_v35, %v271_v36 }
  0xb5   : > { %v337_v41 = vadd.f32 %v336_v37, %v272_v38 }
  0xb7   : > { %v384_v42 = vmax.f32 %v337_v41, 0.0 }
  0xb9   : > { %577 = vperm.xlu2 %1823, %v384_v42   ;;  %402 = vperm.xlu0 %1822, %v384_v42   ;;  %v295_v53 = vpop.f32.mrf.mxu2  ;;  %v360_v56 = vpop.f32.mrf.mxu3 }
  0xba   : > { %v274_v43 = vpop.f32.mrf.mxu0  ;;  %v339_v44 = vpop.f32.mrf.mxu1  ;;  %v296_v55 = vadd.f32 %v2222_v35, %v295_v53 }
  0xbb   : > { %v275_v45 = vadd.f32 %v2222_v35, %v274_v43 }
  0xbc   : > { %v361_v58 = vadd.f32 %v360_v56, %v296_v55 }
  0xbd   : > { %v340_v46 = vadd.f32 %v339_v44, %v275_v45 }
  0xbe   : > { %v392_v59 = vmax.f32 %v361_v58, 0.0 }
  0xbf   : > { %v385_v47 = vmax.f32 %v340_v46, 0.0 }
  0xc1   : > { %1824 = vset.pattern.permute.xlu2 %v2058_v48  ;;  %407 = vperm.xlu0 %1822, %v385_v47   ;;  %v298_v60 = vpop.f32.mrf.mxu2  ;;  %v363_v61 = vpop.f32.mrf.mxu3 }
  0xc2   : > { %v277_v49 = vpop.f32.mrf.mxu0  ;;  %737 = vperm.xlu2 %1824, %v384_v42   ;;  %v342_v50 = vpop.f32.mrf.mxu1  ;;  %v299_v62 = vadd.f32 %v2222_v35, %v298_v60 }
  0xc3   : > { %v278_v51 = vadd.f32 %v2222_v35, %v277_v49 }
  0xc4   : > { %v364_v63 = vadd.f32 %v363_v61, %v299_v62 }
  0xc5   : > { %v343_v52 = vadd.f32 %v342_v50, %v278_v51 }
  0xc6   : > { %v393_v1 = vmax.f32 %v364_v63, 0.0 }
  0xc7   : > { %v386_v54 = vmax.f32 %v343_v52, 0.0 }
  0xc9   : > { %412 = vperm.xlu1 %1837, %v386_v54   ;;  %1830 = vset.pattern.permute.xlu0 %v2056_v29  ;;  %v301_v0 = vpop.f32.mrf.mxu2  ;;  %v366_v3 = vpop.f32.mrf.mxu3 }
  0xca   : > { %1825 = vset.pattern.permute.xlu2 %v2059_v57  ;;  %581 = vperm.xlu0 %1830, %v385_v47   ;;  %v302_v2 = vadd.f32 %v2222_v35, %v301_v0  ;;  %v280_v6 = vpop.f32.mrf.mxu0  ;;  %v345_v8 = vpop.f32.mrf.mxu1 }
  0xcb   : > { %897 = vperm.xlu2 %1825, %v384_v42   ;;  %v281_v7 = vadd.f32 %v2222_v35, %v280_v6 }
  0xcc   : > { %v367_v4 = vadd.f32 %v366_v3, %v302_v2 }
  0xcd   : > { %v346_v9 = vadd.f32 %v345_v8, %v281_v7 }
  0xce   : > { %v394_v5 = vmax.f32 %v367_v4, 0.0 }
  0xcf   : > { %v387_v11 = vmax.f32 %v346_v9, 0.0 }
  0xd1   : > { %1838 = vset.pattern.permute.xlu1 %v2056_v29  ;;  %v304_v10 = vpop.f32.mrf.mxu2  ;;  %v369_v12 = vpop.f32.mrf.mxu3 }
  0xd2   : > { %585 = vperm.xlu1 %1838, %v386_v54   ;;  %1831 = vset.pattern.permute.xlu0 %v2058_v48  ;;  %v305_v18 = vadd.f32 %v2222_v35, %v304_v10  ;;  %v283_v20 = vpop.f32.mrf.mxu0  ;;  %v348_v23 = vpop.f32.mrf.mxu1 }
  0xd3   : > { %1826 = vset.pattern.permute.xlu2 %v2057_v30  ;;  %741 = vperm.xlu0 %1831, %v385_v47   ;;  %v284_v21 = vadd.f32 %v2222_v35, %v283_v20 }
  0xd4   : > { %442 = vperm.xlu2 %1826, %v392_v59   ;;  %v370_v19 = vadd.f32 %v369_v12, %v305_v18 }
  0xd5   : > { %v349_v24 = vadd.f32 %v348_v23, %v284_v21 }
  0xd6   : > { %v395_v22 = vmax.f32 %v370_v19, 0.0 }
  0xd7   : > { %v388_v27 = vmax.f32 %v349_v24, 0.0 }
  0xd9   : > { %v307_v13 = vpop.f32.mrf.mxu2  ;;  %v372_v15 = vpop.f32.mrf.mxu3 }
  0xda   : > { %1839 = vset.pattern.permute.xlu1 %v2058_v48  ;;  %v308_v14 = vadd.f32 %v2222_v35, %v307_v13  ;;  %v286_v26 = vpop.f32.mrf.mxu0  ;;  %v351_v28 = vpop.f32.mrf.mxu1 }
  0xdb   : > { %745 = vperm.xlu1 %1839, %v386_v54   ;;  %1832 = vset.pattern.permute.xlu0 %v2059_v57  ;;  %v287_v46 = vadd.f32 %v2222_v35, %v286_v26 }
  0xdc   : > { %1827 = vset.pattern.permute.xlu2 %v2056_v29  ;;  %901 = vperm.xlu0 %1832, %v385_v47   ;;  %v373_v16 = vadd.f32 %v372_v15, %v308_v14 }
  0xdd   : > { %609 = vperm.xlu2 %1827, %v392_v59   ;;  %v352_v49 = vadd.f32 %v351_v28, %v287_v46 }
  0xde   : > { %v396_v17 = vmax.f32 %v373_v16, 0.0 }
  0xdf   : > { %v389_v52 = vmax.f32 %v352_v49, 0.0 }
  0xe1   : > { %v310_v38 = vpop.f32.mrf.mxu2  ;;  %v375_v41 = vpop.f32.mrf.mxu3 }
  0xe2   : > { %v289_v32 = vpop.f32.mrf.mxu0  ;;  %v354_v34 = vpop.f32.mrf.mxu1  ;;  %v311_v40 = vadd.f32 %v2222_v35, %v310_v38 }
  0xe3   : > { %1840 = vset.pattern.permute.xlu1 %v2059_v57  ;;  %v290_v33 = vadd.f32 %v2222_v35, %v289_v32 }
  0xe4   : > { %905 = vperm.xlu1 %1840, %v386_v54   ;;  %1833 = vset.pattern.permute.xlu0 %v2057_v30  ;;  %v376_v43 = vadd.f32 %v375_v41, %v311_v40 }
  0xe5   : > { %1828 = vset.pattern.permute.xlu2 %v2058_v48  ;;  %447 = vperm.xlu0 %1833, %v393_v1   ;;  %v355_v36 = vadd.f32 %v354_v34, %v290_v33 }
  0xe6   : > { %769 = vperm.xlu2 %1828, %v392_v59   ;;  %v397_v45 = vmax.f32 %v376_v43, 0.0 }
  0xe7   : > { %v390_v39 = vmax.f32 %v355_v36, 0.0 }
  0xe9   : > { %v313_v51 = vpop.f32.mrf.mxu2  ;;  %v378_v55 = vpop.f32.mrf.mxu3 }
  0xea   : > { %v357_v6 = vpop.f32.mrf.mxu1 }
  0xec   : > { %1841 = vset.pattern.permute.xlu1 %v2057_v30 }
  0xed   : > { %452 = vperm.xlu1 %1841, %v394_v5   ;;  %1834 = vset.pattern.permute.xlu0 %v2056_v29 }
  0xee   : > { %1829 = vset.pattern.permute.xlu2 %v2059_v57  ;;  %613 = vperm.xlu0 %1834, %v393_v1  }
  0xef   : > { %929 = vperm.xlu2 %1829, %v392_v59  }
  0xf1   : > { %v316_v58 = vpop.f32.mrf.mxu2  ;;  %v381_v62 = vpop.f32.mrf.mxu3 }
  0xf2   : > { %v317_v61 = vadd.f32 %v2222_v35, %v316_v58 }
  0xf4   : > { %v382_v0 = vadd.f32 %v381_v62, %v317_v61 }
  0xf5   : > { %1842 = vset.pattern.permute.xlu1 %v2056_v29 }
  0xf6   : > { %617 = vperm.xlu1 %1842, %v394_v5   ;;  %1835 = vset.pattern.permute.xlu0 %v2058_v48  ;;  %v399_v4 = vmax.f32 %v382_v0, 0.0 }
  0xf7   : > { %1846 = vset.pattern.permute.xlu2 %v2056_v29  ;;  %773 = vperm.xlu0 %1835, %v393_v1  }
  0xf8   : > { %589 = vperm.xlu2 %1846, %v387_v11  }
  0xfe   : > { %1843 = vset.pattern.permute.xlu1 %v2058_v48 }
  0xff   : > { %777 = vperm.xlu1 %1843, %v394_v5   ;;  %1836 = vset.pattern.permute.xlu0 %v2059_v57 }
 0x100   : > { %1847 = vset.pattern.permute.xlu2 %v2058_v48  ;;  %933 = vperm.xlu0 %1836, %v393_v1   ;;  %v292_v1 = vpop.f32.mrf.mxu0 }
 0x101   : > { %749 = vperm.xlu2 %1847, %v387_v11   ;;  %v293_v3 = vadd.f32 %v2222_v35, %v292_v1 }
 0x103   : > { %v358_v7 = vadd.f32 %v357_v6, %v293_v3 }
 0x105   : > { %v391_v9 = vmax.f32 %v358_v7, 0.0 }
 0x107   : > { %1844 = vset.pattern.permute.xlu1 %v2059_v57 }
 0x108   : > { %937 = vperm.xlu1 %1844, %v394_v5   ;;  %1857 = vset.pattern.permute.xlu0 %v2057_v30 }
 0x109   : > { %1848 = vset.pattern.permute.xlu2 %v2059_v57  ;;  %462 = vperm.xlu0 %1857, %v396_v17  }
 0x10a   : > { %909 = vperm.xlu2 %1848, %v387_v11  }
 0x110   : > { %1845 = vset.pattern.permute.xlu1 %v2057_v30 }
 0x111   : > { %417 = vperm.xlu1 %1845, %v387_v11   ;;  %1858 = vset.pattern.permute.xlu0 %v2056_v29  ;;  %v314_v11 = vadd.f32 %v2222_v35, %v313_v51 }
 0x112   : > { %1849 = vset.pattern.permute.xlu2 %v2057_v30  ;;  %625 = vperm.xlu0 %1858, %v396_v17  }
 0x113   : > { %457 = vperm.xlu2 %1849, %v395_v22   ;;  %v2263_v25 = vpop.permute.xlu2 %577  ;;  %v379_v13 = vadd.f32 %v378_v55, %v314_v11 }
 0x114   : > { %v640_v32 = vmul.f32 %v2222_v35, %v2263_v25 }
 0x115   : > { %v398_v15 = vmax.f32 %v379_v13, 0.0 }
 0x119   : > { %1854 = vset.pattern.permute.xlu1 %v2056_v29 }
 0x11a   : > { %593 = vperm.xlu1 %1854, %v388_v27   ;;  %1859 = vset.pattern.permute.xlu0 %v2058_v48 }
 0x11b   : > { %1850 = vset.pattern.permute.xlu2 %v2056_v29  ;;  %785 = vperm.xlu0 %1859, %v396_v17  }
 0x11c   : > { %621 = vperm.xlu2 %1850, %v395_v22   ;;  %v2268_v31 = vpop.permute.xlu2 %737 }
 0x11d   : > { %v800_v25 = vmul.f32 %v2222_v35, %v2268_v31 }
 0x122   : > { %1855 = vset.pattern.permute.xlu1 %v2058_v48 }
 0x123   : > { %753 = vperm.xlu1 %1855, %v388_v27   ;;  %1860 = vset.pattern.permute.xlu0 %v2059_v57 }
 0x124   : > { %1851 = vset.pattern.permute.xlu2 %v2058_v48  ;;  %945 = vperm.xlu0 %1860, %v396_v17  }
 0x125   : > { %781 = vperm.xlu2 %1851, %v395_v22   ;;  %v2274_v37 = vpop.permute.xlu2 %897 }
 0x12b   : > { %1856 = vset.pattern.permute.xlu1 %v2059_v57  ;;  %v2278_v42 = vpop.permute.xlu0 %402 }
 0x12c   : > { %913 = vperm.xlu1 %1856, %v388_v27   ;;  %1868 = vset.pattern.permute.xlu0 %v2057_v30  ;;  %v480_v24 = vmul.f32 %v2222_v35, %v2278_v42 }
 0x12d   : > { %1852 = vset.pattern.permute.xlu2 %v2059_v57  ;;  %432 = vperm.xlu0 %1868, %v390_v39  }
 0x12e   : > { %941 = vperm.xlu2 %1852, %v395_v22   ;;  %v2282_v44 = vpop.permute.xlu2 %442 }
 0x12f   : > { %v488_v22 = vmul.f32 %v2222_v35, %v2282_v44  ;;  %v960_v44 = vmul.f32 %v2222_v35, %v2274_v37 }
 0x133   : > { %v2285_v47 = vpop.permute.xlu0 %407 }
 0x134   : > { %1864 = vset.pattern.permute.xlu1 %v2057_v30  ;;  %v481_v36 = vmul.f32 %v2222_v35, %v2285_v47 }
 0x135   : > { %467 = vperm.xlu1 %1864, %v397_v45   ;;  %1869 = vset.pattern.permute.xlu0 %v2056_v29 }
 0x136   : > { %1853 = vset.pattern.permute.xlu2 %v2057_v30  ;;  %601 = vperm.xlu0 %1869, %v390_v39  }
 0x137   : > { %422 = vperm.xlu2 %1853, %v388_v27   ;;  %v2290_v50 = vpop.permute.xlu2 %609 }
 0x138   : > { %v648_v27 = vmul.f32 %v2222_v35, %v2290_v50 }
 0x13b   : > { %v2292_v53 = vpop.permute.xlu1 %412 }
 0x13c   : > { %v2294_v54 = vpop.permute.xlu0 %581 }
 0x13d   : > { %1865 = vset.pattern.permute.xlu1 %v2056_v29  ;;  %v641_v40 = vmul.f32 %v2222_v35, %v2294_v54 }
 0x13e   : > { %629 = vperm.xlu1 %1865, %v397_v45   ;;  %1870 = vset.pattern.permute.xlu0 %v2058_v48 }
 0x13f   : > { %427 = vperm.xlu2 %1853, %v389_v52   ;;  %761 = vperm.xlu0 %1870, %v390_v39  }
 0x140   : > { %v2298_v56 = vpop.permute.xlu2 %769 }
 0x141   : > { %v808_v33 = vmul.f32 %v2222_v35, %v2298_v56 }
 0x144   : > { %v2300_v59 = vpop.permute.xlu1 %585 }
 0x145   : > { %v2302_v60 = vpop.permute.xlu0 %741  ;;  %v642_v31 = vmul.f32 %v2222_v35, %v2300_v59 }
 0x146   : > { %1866 = vset.pattern.permute.xlu1 %v2058_v48 }
 0x147   : > { %789 = vperm.xlu1 %1866, %v397_v45   ;;  %1861 = vset.pattern.permute.xlu2 %v2056_v29 }
 0x148   : > { %1871 = vset.pattern.permute.xlu0 %v2059_v57  ;;  %597 = vperm.xlu2 %1861, %v389_v52  }
 0x149   : > { %921 = vperm.xlu0 %1871, %v390_v39   ;;  %v2308_v63 = vpop.permute.xlu2 %929  ;;  %v482_v39 = vmul.f32 %v2222_v35, %v2292_v53 }
 0x14d   : > { %v2310_v2 = vpop.permute.xlu1 %745 }
 0x14e   : > { %v2313_v5 = vpop.permute.xlu0 %901  ;;  %v802_v50 = vmul.f32 %v2222_v35, %v2310_v2 }
 0x14f   : > { %1867 = vset.pattern.permute.xlu1 %v2059_v57  ;;  %v961_v51 = vmul.f32 %v2222_v35, %v2313_v5 }
 0x150   : > { %949 = vperm.xlu1 %1867, %v397_v45   ;;  %1862 = vset.pattern.permute.xlu2 %v2058_v48  ;;  %v801_v45 = vmul.f32 %v2222_v35, %v2302_v60 }
 0x151   : > { %1880 = vset.pattern.permute.xlu0 %v2057_v30  ;;  %757 = vperm.xlu2 %1862, %v389_v52  }
 0x152   : > { %477 = vperm.xlu0 %1880, %v399_v4   ;;  %v2318_v8 = vpop.permute.xlu2 %589 }
 0x156   : > { %v2320_v10 = vpop.permute.xlu1 %905 }
 0x157   : > { %v2323_v12 = vpop.permute.xlu0 %447  ;;  %v962_v56 = vmul.f32 %v2222_v35, %v2320_v10  ;;  %v643_v10 = vmul.f32 %v2222_v35, %v2318_v8 }
 0x158   : > { %1876 = vset.pattern.permute.xlu1 %v2057_v30  ;;  %v489_v37 = vmul.f32 %v2222_v35, %v2323_v12 }
 0x159   : > { %437 = vperm.xlu1 %1876, %v391_v9   ;;  %1863 = vset.pattern.permute.xlu2 %v2059_v57 }
 0x15a   : > { %1881 = vset.pattern.permute.xlu0 %v2056_v29  ;;  %917 = vperm.xlu2 %1863, %v389_v52  }
 0x15b   : > { %637 = vperm.xlu0 %1881, %v399_v4   ;;  %v2328_v14 = vpop.permute.xlu2 %749 }
 0x15f   : > { %v2330_v16 = vpop.permute.xlu1 %452 }
 0x160   : > { %v2332_v17 = vpop.permute.xlu0 %613  ;;  %v490_v58 = vmul.f32 %v2222_v35, %v2330_v16  ;;  %v803_v16 = vmul.f32 %v2222_v35, %v2328_v14 }
 0x161   : > { %1877 = vset.pattern.permute.xlu1 %v2056_v29  ;;  %v649_v54 = vmul.f32 %v2222_v35, %v2332_v17 }
 0x162   : > { %605 = vperm.xlu1 %1877, %v391_v9   ;;  %1872 = vset.pattern.permute.xlu2 %v2057_v30 }
 0x163   : > { %1882 = vset.pattern.permute.xlu0 %v2058_v48  ;;  %472 = vperm.xlu2 %1872, %v398_v15  }
 0x164   : > { %797 = vperm.xlu0 %1882, %v399_v4   ;;  %v2337_v18 = vpop.permute.xlu2 %909 }
 0x168   : > { %v2339_v19 = vpop.permute.xlu1 %617 }
 0x169   : > { %v2341_v20 = vpop.permute.xlu0 %773  ;;  %v650_v1 = vmul.f32 %v2222_v35, %v2339_v19 }
 0x16a   : > { %1878 = vset.pattern.permute.xlu1 %v2058_v48  ;;  %v809_v61 = vmul.f32 %v2222_v35, %v2341_v20 }
 0x16b   : > { %765 = vperm.xlu1 %1878, %v391_v9   ;;  %1873 = vset.pattern.permute.xlu2 %v2056_v29 }
 0x16c   : > { %1883 = vset.pattern.permute.xlu0 %v2059_v57  ;;  %633 = vperm.xlu2 %1873, %v398_v15  }
 0x16d   : > { %957 = vperm.xlu0 %1883, %v399_v4   ;;  %v2346_v30 = vpop.permute.xlu2 %457 }
 0x16e   : > { %v491_v62 = vmul.f32 %v2222_v35, %v2346_v30 }
 0x171   : > { %v2348_v21 = vpop.permute.xlu1 %777 }
 0x172   : > { %v2352_v23 = vpop.permute.xlu0 %933  ;;  %v810_v6 = vmul.f32 %v2222_v35, %v2348_v21  ;;  %v963_v21 = vmul.f32 %v2222_v35, %v2337_v18 }
 0x173   : > { %1879 = vset.pattern.permute.xlu1 %v2059_v57 }
 0x174   : > { %925 = vperm.xlu1 %1879, %v391_v9   ;;  %1874 = vset.pattern.permute.xlu2 %v2058_v48 }
 0x175   : > { %528 = vrot.lane.b32.xlu0 %v488_v22, %s2060_s24  ;;  %793 = vperm.xlu2 %1874, %v398_v15  }
 0x176   : > { %v2357_v29 = vpop.permute.xlu2 %621 }
 0x177   : > { %v651_v5 = vmul.f32 %v2222_v35, %v2357_v29 }
 0x17a   : > { %v2361_v26 = vpop.permute.xlu1 %937 }
 0x17b   : > { %v2365_v28 = vpop.permute.xlu0 %462 }
 0x17c   : > { %512 = vrot.lane.b32.xlu1 %v480_v24, %s2060_s24 }
 0x17d   : > { %688 = vrot.lane.b32.xlu0 %v648_v27, %s2061_s5  ;;  %1875 = vset.pattern.permute.xlu2 %v2059_v57 }
 0x17e   : > { %953 = vperm.xlu2 %1875, %v398_v15  }
 0x17f   : > { %v2370_v48 = vpop.permute.xlu2 %781 }
 0x180   : > { %v811_v11 = vmul.f32 %v2222_v35, %v2370_v48  ;;  %v492_v48 = vmul.f32 %v2222_v35, %v2365_v28 }
 0x183   : > { %v418_v34 = vpop.permute.xlu1 %417 }
 0x184   : > { %672 = vrot.lane.b32.xlu1 %v640_v32, %s2061_s5  ;;  %v2379_v38 = vpop.permute.xlu0 %625  ;;  %v483_v4 = vmul.f32 %v2222_v35, %v418_v34 }
 0x185   : > { %848 = vrot.lane.b32.xlu0 %v808_v33, %s2062_s10 }
 0x186   : > { %514 = vrot.lane.b32.xlu2 %v481_v36, %s2060_s24 }
 0x188   : > { %v2383_v57 = vpop.permute.xlu2 %941 }
 0x18c   : > { %v594_v41 = vpop.permute.xlu1 %593  ;;  %832 = vrot.lane.b32.xlu1 %v800_v25, %s2062_s10  ;;  %v652_v25 = vmul.f32 %v2222_v35, %v2379_v38 }
 0x18d   : > { %516 = vrot.lane.b32.xlu0 %v482_v39, %s2060_s24  ;;  %v2393_v42 = vpop.permute.xlu0 %785  ;;  %v644_v19 = vmul.f32 %v2222_v35, %v594_v41 }
 0x18e   : > { %674 = vrot.lane.b32.xlu2 %v641_v40, %s2061_s5 }
 0x191   : > { %v423_v43 = vpop.permute.xlu2 %422 }
 0x192   : > { %v484_v13 = vmul.f32 %v2222_v35, %v423_v43 }
 0x194   : > { %992 = vrot.lane.b32.xlu1 %v960_v44, %s2063_s11  ;;  %v812_v44 = vmul.f32 %v2222_v35, %v2393_v42 }
 0x195   : > { %676 = vrot.lane.b32.xlu0 %v642_v31, %s2061_s5  ;;  %v754_v46 = vpop.permute.xlu1 %753 }
 0x196   : > { %834 = vrot.lane.b32.xlu2 %v801_v45, %s2062_s10  ;;  %v2405_v47 = vpop.permute.xlu0 %945  ;;  %v804_v29 = vmul.f32 %v2222_v35, %v754_v46 }
 0x199   : > { %v428_v49 = vpop.permute.xlu2 %427 }
 0x19a   : > { %v485_v8 = vmul.f32 %v2222_v35, %v428_v49 }
 0x19c   : > { %530 = vrot.lane.b32.xlu1 %v489_v37, %s2060_s24 }
 0x19d   : > { %836 = vrot.lane.b32.xlu0 %v802_v50, %s2062_s10 }
 0x19e   : > { %v914_v52 = vpop.permute.xlu1 %913  ;;  %994 = vrot.lane.b32.xlu2 %v961_v51, %s2063_s11 }
 0x19f   : > { %v2416_v53 = vpop.permute.xlu0 %432  ;;  %v964_v18 = vmul.f32 %v2222_v35, %v914_v52 }
 0x1a0   : > { %v486_v37 = vmul.f32 %v2222_v35, %v2416_v53 }
 0x1a2   : > { %v598_v55 = vpop.permute.xlu2 %597 }
 0x1a3   : > { %v645_v14 = vmul.f32 %v2222_v35, %v598_v55 }
 0x1a4   : > { %690 = vrot.lane.b32.xlu1 %v649_v54, %s2061_s5 }
 0x1a5   : > { %996 = vrot.lane.b32.xlu0 %v962_v56, %s2063_s11 }
 0x1a6   : > { %532 = vrot.lane.b32.xlu2 %v490_v58, %s2060_s24 }
 0x1a7   : > { %v468_v59 = vpop.permute.xlu1 %467 }
 0x1a8   : > { %v2427_v60 = vpop.permute.xlu0 %601  ;;  %v493_v28 = vmul.f32 %v2222_v35, %v468_v59 }
 0x1a9   : > { %v646_v55 = vmul.f32 %v2222_v35, %v2427_v60  ;;  %v968_v60 = vmul.f32 %v2222_v35, %v2308_v63 }
 0x1ab   : > { %v758_v0 = vpop.permute.xlu2 %757 }
 0x1ac   : > { %850 = vrot.lane.b32.xlu1 %v809_v61, %s2062_s10  ;;  %v805_v32 = vmul.f32 %v2222_v35, %v758_v0 }
 0x1ad   : > { %534 = vrot.lane.b32.xlu0 %v491_v62, %s2060_s24 }
 0x1ae   : > { %692 = vrot.lane.b32.xlu2 %v650_v1, %s2061_s5 }
 0x1b0   : > { %v630_v2 = vpop.permute.xlu1 %629 }
 0x1b1   : > { %v2438_v3 = vpop.permute.xlu0 %761  ;;  %v653_v31 = vmul.f32 %v2222_v35, %v630_v2 }
 0x1b2   : > { %v806_v62 = vmul.f32 %v2222_v35, %v2438_v3  ;;  %v971_v3 = vmul.f32 %v2222_v35, %v2383_v57 }
 0x1b4   : > { %518 = vrot.lane.b32.xlu1 %v483_v4, %s2060_s24  ;;  %v918_v7 = vpop.permute.xlu2 %917 }
 0x1b5   : > { %694 = vrot.lane.b32.xlu0 %v651_v5, %s2061_s5  ;;  %v965_v39 = vmul.f32 %v2222_v35, %v918_v7 }
 0x1b6   : > { %852 = vrot.lane.b32.xlu2 %v810_v6, %s2062_s10 }
 0x1b9   : > { %v790_v9 = vpop.permute.xlu1 %789 }
 0x1ba   : > { %v813_v50 = vmul.f32 %v2222_v35, %v790_v9 }
 0x1bb   : > { %v2452_v12 = vpop.permute.xlu0 %921 }
 0x1bc   : > { %678 = vrot.lane.b32.xlu1 %v643_v10, %s2061_s5  ;;  %v966_v5 = vmul.f32 %v2222_v35, %v2452_v12  ;;  %v969_v10 = vmul.f32 %v2222_v35, %v2352_v23 }
 0x1bd   : > { %854 = vrot.lane.b32.xlu0 %v811_v11, %s2062_s10  ;;  %v473_v15 = vpop.permute.xlu2 %472 }
 0x1be   : > { %520 = vrot.lane.b32.xlu2 %v484_v13, %s2060_s24  ;;  %v494_v38 = vmul.f32 %v2222_v35, %v473_v15 }
 0x1c2   : > { %v2460_v17 = vpop.permute.xlu1 %949 }
 0x1c4   : > { %838 = vrot.lane.b32.xlu1 %v803_v16, %s2062_s10  ;;  %v2465_v20 = vpop.permute.xlu0 %477 }
 0x1c5   : > { %522 = vrot.lane.b32.xlu0 %v485_v8, %s2060_s24 }
 0x1c6   : > { %680 = vrot.lane.b32.xlu2 %v644_v19, %s2061_s5  ;;  %v634_v30 = vpop.permute.xlu2 %633 }
 0x1c7   : > { %v654_v42 = vmul.f32 %v2222_v35, %v634_v30 }
 0x1cb   : > { %v438_v22 = vpop.permute.xlu1 %437 }
 0x1cc   : > { %998 = vrot.lane.b32.xlu1 %v963_v21, %s2063_s11  ;;  %v487_v56 = vmul.f32 %v2222_v35, %v438_v22  ;;  %v970_v22 = vmul.f32 %v2222_v35, %v2361_v26 }
 0x1cd   : > { %682 = vrot.lane.b32.xlu0 %v645_v14, %s2061_s5  ;;  %v2475_v24 = vpop.permute.xlu0 %637  ;;  %v495_v14 = vmul.f32 %v2222_v35, %v2465_v20 }
 0x1ce   : > { %840 = vrot.lane.b32.xlu2 %v804_v29, %s2062_s10 }
 0x1cf   : > { %v794_v27 = vpop.permute.xlu2 %793 }
 0x1d0   : > { %v814_v53 = vmul.f32 %v2222_v35, %v794_v27 }
 0x1d4   : > { %v606_v33 = vpop.permute.xlu1 %605  ;;  %536 = vrot.lane.b32.xlu1 %v492_v48, %s2060_s24 }
 0x1d5   : > { %842 = vrot.lane.b32.xlu0 %v805_v32, %s2062_s10  ;;  %v647_v0 = vmul.f32 %v2222_v35, %v606_v33  ;;  %v973_v33 = vmul.f32 %v2222_v35, %v2460_v17 }
 0x1d6   : > { %1000 = vrot.lane.b32.xlu2 %v964_v18, %s2063_s11  ;;  %v2485_v34 = vpop.permute.xlu0 %797  ;;  %v655_v18 = vmul.f32 %v2222_v35, %v2475_v24 }
 0x1d8   : > { %v954_v36 = vpop.permute.xlu2 %953 }
 0x1d9   : > { %v974_v11 = vmul.f32 %v2222_v35, %v954_v36 }
 0x1dc   : > { %696 = vrot.lane.b32.xlu1 %v652_v25, %s2061_s5 }
 0x1dd   : > { %1002 = vrot.lane.b32.xlu0 %v965_v39, %s2063_s11  ;;  %v766_v40 = vpop.permute.xlu1 %765 }
 0x1de   : > { %538 = vrot.lane.b32.xlu2 %v493_v28, %s2060_s24  ;;  %v807_v63 = vmul.f32 %v2222_v35, %v766_v40  ;;  %v815_v28 = vmul.f32 %v2222_v35, %v2485_v34 }
 0x1df   : > { %v2494_v41 = vpop.permute.xlu0 %957 }
 0x1e0   : > { %v2496_v43 = vpop.permute.xlu2 %514 }
 0x1e4   : > { %856 = vrot.lane.b32.xlu1 %v812_v44, %s2062_s10 }
 0x1e5   : > { %540 = vrot.lane.b32.xlu0 %v494_v38, %s2060_s24 }
 0x1e6   : > { %v926_v45 = vpop.permute.xlu1 %925  ;;  %698 = vrot.lane.b32.xlu2 %v653_v31, %s2061_s5 }
 0x1e7   : > { %v2505_v46 = vpop.permute.xlu0 %528  ;;  %v967_v12 = vmul.f32 %v2222_v35, %v926_v45  ;;  %v972_v45 = vmul.f32 %v2222_v35, %v2405_v47 }
 0x1e8   : > { %v2507_v49 = vpop.permute.xlu2 %674 }
 0x1ec   : > { %524 = vrot.lane.b32.xlu1 %v486_v37, %s2060_s24 }
 0x1ed   : > { %700 = vrot.lane.b32.xlu0 %v654_v42, %s2061_s5 }
 0x1ee   : > { %v2515_v51 = vpop.permute.xlu1 %512  ;;  %858 = vrot.lane.b32.xlu2 %v813_v50, %s2062_s10 }
 0x1ef   : > { %v2518_v52 = vpop.permute.xlu0 %688 }
 0x1f0   : > { %v2520_v54 = vpop.permute.xlu2 %834 }
 0x1f4   : > { %684 = vrot.lane.b32.xlu1 %v646_v55, %s2061_s5 }
 0x1f5   : > { %860 = vrot.lane.b32.xlu0 %v814_v53, %s2062_s10 }
 0x1f6   : > { %v2528_v58 = vpop.permute.xlu1 %672  ;;  %526 = vrot.lane.b32.xlu2 %v487_v56, %s2060_s24 }
 0x1f7   : > { %v2531_v59 = vpop.permute.xlu0 %848 }
 0x1f8   : > { %v2533_v61 = vpop.permute.xlu2 %994 }
 0x1fc   : > { %844 = vrot.lane.b32.xlu1 %v806_v62, %s2062_s10  ;;  %v975_v62 = vmul.f32 %v2222_v35, %v2494_v41 }
 0x1fd   : > { %1008 = vrot.lane.b32.xlu0 %v968_v60, %s2063_s11 }
 0x1fe   : > { %v2542_v1 = vpop.permute.xlu1 %832  ;;  %686 = vrot.lane.b32.xlu2 %v647_v0, %s2061_s5 }
 0x1ff   : > { %v517_v2 = vpop.permute.xlu0 %516 }
 0x200   : > { %v533_v4 = vpop.permute.xlu2 %532  ;;  %v562_v57 = vadd.f32 %v2222_v35, %v517_v2 }
 0x201   : > { %v570_v13 = vadd.f32 %v2222_v35, %v533_v4 }
 0x204   : > { %1004 = vrot.lane.b32.xlu1 %v966_v5, %s2063_s11 }
 0x205   : > { %1014 = vrot.lane.b32.xlu0 %v971_v3, %s2063_s11 }
 0x206   : > { %v2552_v6 = vpop.permute.xlu1 %992  ;;  %846 = vrot.lane.b32.xlu2 %v807_v63, %s2062_s10 }
 0x207   : > { %v677_v7 = vpop.permute.xlu0 %676 }
 0x208   : > { %v693_v9 = vpop.permute.xlu2 %692  ;;  %v722_v15 = vadd.f32 %v677_v7, %v562_v57 }
 0x209   : > { %v730_v8 = vadd.f32 %v693_v9, %v570_v13 }
 0x20c   : > { %1010 = vrot.lane.b32.xlu1 %v969_v10, %s2063_s11 }
 0x20d   : > { %1020 = vrot.lane.b32.xlu0 %v974_v11, %s2063_s11 }
 0x20e   : > { %1006 = vrot.lane.b32.xlu2 %v967_v12, %s2063_s11  ;;  %v2564_v16 = vpop.permute.xlu1 %530 }
 0x20f   : > { %v837_v19 = vpop.permute.xlu0 %836 }
 0x210   : > { %v882_v23 = vadd.f32 %v837_v19, %v722_v15  ;;  %v853_v30 = vpop.permute.xlu2 %852 }
 0x211   : > { %v2566_v21 = vadd.f32 %v853_v30, %v730_v8 }
 0x214   : > { %542 = vrot.lane.b32.xlu1 %v495_v14, %s2060_s24 }
 0x216   : > { %1012 = vrot.lane.b32.xlu2 %v970_v22, %s2063_s11  ;;  %v2574_v29 = vpop.permute.xlu1 %690 }
 0x217   : > { %v997_v27 = vpop.permute.xlu0 %996 }
 0x218   : > { %v2576_v48 = vadd.f32 %v997_v27, %v882_v23  ;;  %v521_v32 = vpop.permute.xlu2 %520 }
 0x219   : > { %v564_v20 = vadd.f32 %v2222_v35, %v521_v32 }
 0x21c   : > { %702 = vrot.lane.b32.xlu1 %v655_v18, %s2061_s5 }
 0x21e   : > { %1018 = vrot.lane.b32.xlu2 %v973_v33, %s2063_s11  ;;  %v2584_v26 = vpop.permute.xlu1 %850 }
 0x21f   : > { %v535_v36 = vpop.permute.xlu0 %534 }
 0x220   : > { %v681_v25 = vpop.permute.xlu2 %680  ;;  %v571_v24 = vadd.f32 %v2222_v35, %v535_v36 }
 0x221   : > { %v724_v39 = vadd.f32 %v681_v25, %v564_v20 }
 0x224   : > { %862 = vrot.lane.b32.xlu1 %v815_v28, %s2062_s10 }
 0x226   : > { %1072 = vrot.lane.b32.xlu2 %v2222_v35, %s2064_s12  ;;  %v519_v17 = vpop.permute.xlu1 %518 }
 0x227   : > { %v695_v40 = vpop.permute.xlu0 %694  ;;  %v563_v37 = vadd.f32 %v2222_v35, %v519_v17 }
 0x228   : > { %v731_v44 = vadd.f32 %v695_v40, %v571_v24  ;;  %v841_v38 = vpop.permute.xlu2 %840 }
 0x229   : > { %v884_v31 = vadd.f32 %v841_v38, %v724_v39  ;;  %v568_v38 = vadd.f32 %v2222_v35, %v2505_v46 }
 0x22c   : > { %1016 = vrot.lane.b32.xlu1 %v972_v45, %s2063_s11 }
 0x22e   : > { %v679_v34 = vpop.permute.xlu1 %678 }
 0x22f   : > { %v723_v42 = vadd.f32 %v679_v34, %v563_v37  ;;  %v855_v50 = vpop.permute.xlu0 %854  ;;  %v728_v34 = vadd.f32 %v2518_v52, %v568_v38 }
 0x230   : > { %v2596_v55 = vadd.f32 %v855_v50, %v731_v44  ;;  %v1001_v53 = vpop.permute.xlu2 %1000  ;;  %v561_v44 = vadd.f32 %v2222_v35, %v2496_v43 }
 0x231   : > { %v2598_v56 = vadd.f32 %v1001_v53, %v884_v31  ;;  %v560_v31 = vadd.f32 %v2222_v35, %v2515_v51  ;;  %v888_v43 = vadd.f32 %v2531_v59, %v728_v34 }
 0x232   : > { %v721_v37 = vadd.f32 %v2507_v49, %v561_v44 }
 0x234   : > { %1022 = vrot.lane.b32.xlu1 %v975_v62, %s2063_s11  ;;  %v881_v62 = vadd.f32 %v2520_v54, %v721_v37 }
 0x236   : > { %v839_v60 = vpop.permute.xlu1 %838  ;;  %v1041_v46 = vadd.f32 %v2533_v61, %v881_v62 }
 0x237   : > { %v883_v0 = vadd.f32 %v839_v60, %v723_v42  ;;  %v523_v47 = vpop.permute.xlu0 %522  ;;  %v720_v42 = vadd.f32 %v2528_v58, %v560_v31 }
 0x238   : > { %v539_v2 = vpop.permute.xlu2 %538  ;;  %v565_v4 = vadd.f32 %v2222_v35, %v523_v47  ;;  %v1057_v58 = vmax.f32 %v1041_v46, 0.0 }
 0x239   : > { %v573_v3 = vadd.f32 %v2222_v35, %v539_v2  ;;  %v880_v60 = vadd.f32 %v2542_v1, %v720_v42 }
 0x23b   : > { %v1040_v51 = vadd.f32 %v2552_v6, %v880_v60 }
 0x23c   : > { %1171 = vrot.lane.b32.xlu1 %v2222_v35, %s2065_s18 }
 0x23d   : > { %v1056_v2 = vmax.f32 %v1040_v51, 0.0 }
 0x23e   : > { %v999_v5 = vpop.permute.xlu1 %998 }
 0x23f   : > { %v2606_v63 = vadd.f32 %v999_v5, %v883_v0  ;;  %v683_v7 = vpop.permute.xlu0 %682  ;;  %v569_v0 = vadd.f32 %v2222_v35, %v2564_v16 }
 0x240   : > { %v2608_v9 = vadd.f32 %v683_v7, %v565_v4  ;;  %v699_v41 = vpop.permute.xlu2 %698 }
 0x241   : > { %v733_v10 = vadd.f32 %v699_v41, %v573_v3  ;;  %v729_v52 = vadd.f32 %v2574_v29, %v569_v0  ;;  %v1058_v3 = vmax.f32 %v2576_v48, 0.0 }
 0x243   : > { %v889_v4 = vadd.f32 %v2584_v26, %v729_v52 }
 0x244   : > { %1302 = vrot.lane.b32.xlu1 %v2222_v35, %s2066_s19 }
 0x246   : > { %v537_v11 = vpop.permute.xlu1 %536 }
 0x247   : > { %v2611_v12 = vpop.permute.xlu0 %842  ;;  %v572_v15 = vadd.f32 %v2222_v35, %v537_v11 }
 0x248   : > { %v859_v57 = vpop.permute.xlu2 %858 }
 0x249   : > { %v2613_v13 = vadd.f32 %v859_v57, %v733_v10  ;;  %v1060_v57 = vmax.f32 %v2598_v56, 0.0 }
 0x24e   : > { %v697_v8 = vpop.permute.xlu1 %696 }
 0x24f   : > { %v732_v19 = vadd.f32 %v697_v8, %v572_v15  ;;  %v2616_v23 = vpop.permute.xlu0 %1002  ;;  %v1059_v15 = vmax.f32 %v2606_v63, 0.0  ;;  %v2716_v63 = vld [vmem:[%s3083_s2] ss:$0 sm:$0xff] }
 0x250   : > { %v527_v30 = vpop.permute.xlu2 %526 }
 0x251   : > { %v567_v22 = vadd.f32 %v2222_v35, %v527_v30 }
 0x256   : > { %v857_v14 = vpop.permute.xlu1 %856 }
 0x257   : > { %v2619_v27 = vadd.f32 %v857_v14, %v732_v19  ;;  %v2623_v33 = vpop.permute.xlu0 %540  ;;  %v885_v14 = vadd.f32 %v2611_v12, %v2608_v9 }
 0x258   : > { %v687_v32 = vpop.permute.xlu2 %686  ;;  %v574_v9 = vadd.f32 %v2716_v63, %v2623_v33 }
 0x259   : > { %v2621_v18 = vadd.f32 %v687_v32, %v567_v22  ;;  %v1045_v56 = vadd.f32 %v2616_v23, %v885_v14 }
 0x25b   : > { %v1061_v44 = vmax.f32 %v1045_v56, 0.0 }
 0x25e   : > { %v2625_v20 = vpop.permute.xlu1 %524 }
 0x25f   : > { %v2629_v25 = vpop.permute.xlu0 %700 }
 0x260   : > { %v2627_v36 = vpop.permute.xlu2 %846  ;;  %v734_v12 = vadd.f32 %v2629_v25, %v574_v9 }
 0x261   : > { %v887_v23 = vadd.f32 %v2627_v36, %v2621_v18  ;;  %v566_v18 = vadd.f32 %v2716_v63, %v2625_v20 }
 0x266   : > { %v2631_v39 = vpop.permute.xlu1 %684 }
 0x267   : > { %v2635_v24 = vpop.permute.xlu0 %860 }
 0x268   : > { %v2633_v28 = vpop.permute.xlu2 %1006  ;;  %v894_v38 = vadd.f32 %v2635_v24, %v734_v12 }
 0x269   : > { %v1047_v34 = vadd.f32 %v2633_v28, %v887_v23 }
 0x26b   : > { %v1063_v36 = vmax.f32 %v1047_v34, 0.0 }
 0x26e   : > { %v2637_v17 = vpop.permute.xlu1 %844 }
 0x26f   : > { %v1009_v50 = vpop.permute.xlu0 %1008 }
 0x270   : > { %v1013_v40 = vpop.permute.xlu2 %1012  ;;  %v1048_v49 = vadd.f32 %v1009_v50, %v888_v43  ;;  %v726_v50 = vadd.f32 %v2631_v39, %v566_v18 }
 0x271   : > { %v1050_v6 = vadd.f32 %v1013_v40, %v2566_v21 }
 0x272   : > { %v1064_v54 = vmax.f32 %v1048_v49, 0.0  ;;  %v886_v43 = vadd.f32 %v2637_v17, %v726_v50 }
 0x273   : > { %v1066_v26 = vmax.f32 %v1050_v6, 0.0 }
 0x276   : > { %v2645_v45 = vpop.permute.xlu1 %1004 }
 0x277   : > { %v1015_v7 = vpop.permute.xlu0 %1014 }
 0x278   : > { %v1019_v53 = vpop.permute.xlu2 %1018  ;;  %v1051_v11 = vadd.f32 %v1015_v7, %v2596_v55 }
 0x279   : > { %v1053_v22 = vadd.f32 %v1019_v53, %v2613_v13 }
 0x27a   : > { %v1067_v8 = vmax.f32 %v1051_v11, 0.0 }
 0x27b   : > { %v1069_v32 = vmax.f32 %v1053_v22, 0.0 }
 0x27e   : > { %v1011_v47 = vpop.permute.xlu1 %1010 }
 0x27f   : > { %v1049_v59 = vadd.f32 %v1011_v47, %v889_v4  ;;  %v1021_v40 = vpop.permute.xlu0 %1020 }
 0x280   : > { %v2659_v5 = vpop.permute.xlu2 %1072  ;;  %v1054_v37 = vadd.f32 %v1021_v40, %v894_v38 }
 0x281   : > { %v2662_v1 = vmul.f32 %v2659_v5, %v1056_v2  ;;  %v2665_v61 = vmul.f32 %v2659_v5, %v1057_v58  ;;  %v2668_v35 = vmul.f32 %v2659_v5, %v1064_v54  ;;  %v1065_v16 = vmax.f32 %v1049_v59, 0.0 }
 0x282   : > { %v2682_v21 = vmul.f32 %v2659_v5, %v1066_v26  ;;  %v2685_v10 = vmul.f32 %v2659_v5, %v1058_v3  ;;  %v2697_v19 = vmul.f32 %v2659_v5, %v1059_v15  ;;  %v2700_v30 = vmul.f32 %v2659_v5, %v1060_v57 }
 0x283   : > { %1107 = vrot.lane.b32.xlu0 %v2662_v1, %s2067_s21  ;;  %1109 = vrot.lane.b32.xlu1 %v2665_v61, %s2067_s21  ;;  %v2679_v41 = vmul.f32 %v2659_v5, %v1065_v16  ;;  %v2705_v55 = vmul.f32 %v2659_v5, %v1067_v8  ;;  %v2727_v31 = vmul.f32 %v2659_v5, %v1069_v32  ;;  %v1070_v25 = vmax.f32 %v1054_v37, 0.0 }
 0x284   : > { %1123 = vrot.lane.b32.xlu2 %v2668_v35, %s2067_s21  ;;  %v2730_v33 = vmul.f32 %v2659_v5, %v1061_v44  ;;  %v2742_v62 = vmul.f32 %v2659_v5, %v1063_v36 }
 0x285   : > { %v2745_v28 = vmul.f32 %v2659_v5, %v1070_v25 }
 0x286   : > { %v543_v29 = vpop.permute.xlu1 %542 }
 0x287   : > { %v575_v20 = vadd.f32 %v2716_v63, %v543_v29 }
 0x28b   : > { %1125 = vrot.lane.b32.xlu0 %v2679_v41, %s2067_s21  ;;  %1127 = vrot.lane.b32.xlu1 %v2682_v21, %s2067_s21 }
 0x28c   : > { %1111 = vrot.lane.b32.xlu2 %v2685_v10, %s2067_s21 }
 0x28e   : > { %v703_v48 = vpop.permute.xlu1 %702 }
 0x28f   : > { %v735_v39 = vadd.f32 %v703_v48, %v575_v20 }
 0x293   : > { %1113 = vrot.lane.b32.xlu0 %v2697_v19, %s2067_s21  ;;  %1115 = vrot.lane.b32.xlu1 %v2700_v30, %s2067_s21 }
 0x294   : > { %1129 = vrot.lane.b32.xlu2 %v2705_v55, %s2067_s21 }
 0x296   : > { %v863_v13 = vpop.permute.xlu1 %862 }
 0x297   : > { %v895_v17 = vadd.f32 %v863_v13, %v735_v39 }
 0x29b   : > { %1133 = vrot.lane.b32.xlu1 %v2727_v31, %s2067_s21 }
 0x29c   : > { %1117 = vrot.lane.b32.xlu2 %v2730_v33, %s2067_s21 }
 0x29e   : > { %v1017_v24 = vpop.permute.xlu1 %1016 }
 0x29f   : > { %v1052_v42 = vadd.f32 %v1017_v24, %v2619_v27  ;;  %v1046_v27 = vadd.f32 %v2645_v45, %v886_v43  ;;  %v2068_v45 = vmov 12  }
 0x2a0   : > { %1886 = vset.pattern.permute.xlu1 %v2068_v45  ;;  %1884 = vset.pattern.permute.xlu2 %v2068_v45 }
 0x2a1   : > { %v1068_v53 = vmax.f32 %v1052_v42, 0.0  ;;  %v1062_v51 = vmax.f32 %v1046_v27, 0.0  ;;  %1885 = vset.pattern.permute.xlu0 %v2068_v45 }
 0x2a3   : > { %v2749_v60 = vmul.f32 %v2659_v5, %v1068_v53  ;;  %1121 = vrot.lane.b32.xlu1 %v2742_v62, %s2067_s21  ;;  %v2760_v49 = vmul.f32 %v2659_v5, %v1062_v51 }
 0x2a4   : > { %1135 = vrot.lane.b32.xlu2 %v2745_v28, %s2067_s21 }
 0x2a5   : > { %1131 = vrot.lane.b32.xlu0 %v2749_v60, %s2067_s21 }
 0x2a6   : > { %v1023_v46 = vpop.permute.xlu1 %1022 }
 0x2a7   : > { %v1055_v0 = vadd.f32 %v1023_v46, %v895_v17 }
 0x2a9   : > { %v1071_v52 = vmax.f32 %v1055_v0, 0.0 }
 0x2ab   : > { %v2765_v47 = vmul.f32 %v2659_v5, %v1071_v52 }
 0x2ad   : > { %1119 = vrot.lane.b32.xlu0 %v2760_v49, %s2067_s21 }
 0x2ae   : > { %v2769_v2 = vpop.permute.xlu1 %1171 }
 0x2b5   : > { %1137 = vrot.lane.b32.xlu0 %v2765_v47, %s2067_s21 }
 0x2b6   : > { %v2773_v16 = vpop.permute.xlu1 %1302 }
 0x2de   : > { %v1124_v58 = vpop.permute.xlu2 %1123 }
 0x2df   : > { %v1163_v48 = vadd.f32 %v1124_v58, %v2668_v35 }
 0x2e6   : > { %v1112_v4 = vpop.permute.xlu2 %1111 }
 0x2e7   : > { %v1157_v54 = vadd.f32 %v1112_v4, %v2685_v10 }
 0x2e9   : > { %v1176_v59 = vadd.f32 %v2769_v2, %v1157_v54 }
 0x2eb   : > { %v1192_v6 = vmax.f32 %v1176_v59, 0.0 }
 0x2ed   : > { %1218 = vperm.xlu1 %1886, %v1192_v6  }
 0x2ee   : > { %v1130_v35 = vpop.permute.xlu2 %1129 }
 0x2ef   : > { %v1166_v23 = vadd.f32 %v1130_v35, %v2705_v55 }
 0x2f1   : > { %v1185_v18 = vadd.f32 %v2769_v2, %v1166_v23 }
 0x2f3   : > { %v1201_v42 = vmax.f32 %v1185_v18, 0.0 }
 0x2f5   : > { %v1110_v5 = vpop.permute.xlu1 %1109  ;;  %v1108_v29 = vpop.permute.xlu0 %1107 }
 0x2f6   : > { %v1156_v26 = vadd.f32 %v1110_v5, %v2665_v61  ;;  %v1155_v3 = vadd.f32 %v1108_v29, %v2662_v1  ;;  %v1182_v61 = vadd.f32 %v2769_v2, %v1163_v48  ;;  %v1118_v25 = vpop.permute.xlu2 %1117 }
 0x2f8   : > { %v1175_v7 = vadd.f32 %v2769_v2, %v1156_v26  ;;  %v1174_v11 = vadd.f32 %v2769_v2, %v1155_v3  ;;  %v1198_v13 = vmax.f32 %v1182_v61, 0.0 }
 0x2fa   : > { %v1191_v57 = vmax.f32 %v1175_v7, 0.0  ;;  %v1190_v10 = vmax.f32 %v1174_v11, 0.0 }
 0x2fc   : > { %1213 = vperm.xlu0 %1885, %v1191_v57   ;;  %1208 = vperm.xlu2 %1884, %v1190_v10  }
 0x2fd   : > { %v1128_v15 = vpop.permute.xlu1 %1127  ;;  %v1126_v8 = vpop.permute.xlu0 %1125 }
 0x2fe   : > { %v1165_v14 = vadd.f32 %v1128_v15, %v2682_v21  ;;  %v1164_v22 = vadd.f32 %v1126_v8, %v2679_v41  ;;  %v1136_v27 = vpop.permute.xlu2 %1135 }
 0x2ff   : > { %v1169_v51 = vadd.f32 %v1136_v27, %v2745_v28 }
 0x300   : > { %v1184_v1 = vadd.f32 %v2769_v2, %v1165_v14  ;;  %v1183_v56 = vadd.f32 %v2769_v2, %v1164_v22 }
 0x301   : > { %v1188_v52 = vadd.f32 %v2769_v2, %v1169_v51 }
 0x302   : > { %v1200_v9 = vmax.f32 %v1184_v1, 0.0  ;;  %v1199_v12 = vmax.f32 %v1183_v56, 0.0 }
 0x303   : > { %v1204_v58 = vmax.f32 %v1188_v52, 0.0 }
 0x304   : > { %1258 = vperm.xlu1 %1886, %v1200_v9   ;;  %1248 = vperm.xlu2 %1884, %v1198_v13  }
 0x305   : > { %1253 = vperm.xlu0 %1885, %v1199_v12   ;;  %v1116_v32 = vpop.permute.xlu1 %1115  ;;  %v1114_v40 = vpop.permute.xlu0 %1113 }
 0x306   : > { %v1159_v44 = vadd.f32 %v1116_v32, %v2700_v30  ;;  %v1158_v21 = vadd.f32 %v1114_v40, %v2697_v19  ;;  %v1160_v19 = vadd.f32 %v1118_v25, %v2730_v33 }
 0x308   : > { %v1178_v41 = vadd.f32 %v2769_v2, %v1159_v44  ;;  %v1177_v38 = vadd.f32 %v2769_v2, %v1158_v21  ;;  %v1179_v55 = vadd.f32 %v2769_v2, %v1160_v19 }
 0x30a   : > { %v1194_v37 = vmax.f32 %v1178_v41, 0.0  ;;  %v1193_v34 = vmax.f32 %v1177_v38, 0.0 }
 0x30c   : > { %1228 = vperm.xlu1 %1886, %v1194_v37   ;;  %1223 = vperm.xlu2 %1884, %v1193_v34  }
 0x30d   : > { %v1134_v24 = vpop.permute.xlu1 %1133 }
 0x30e   : > { %v1168_v36 = vadd.f32 %v1134_v24, %v2727_v31  ;;  %v1195_v31 = vmax.f32 %v1179_v55, 0.0 }
 0x310   : > { %v1187_v30 = vadd.f32 %v2769_v2, %v1168_v36 }
 0x312   : > { %v1203_v50 = vmax.f32 %v1187_v30, 0.0 }
 0x314   : > { %1273 = vperm.xlu1 %1886, %v1203_v50   ;;  %1263 = vperm.xlu2 %1884, %v1201_v42  }
 0x315   : > { %v1122_v53 = vpop.permute.xlu1 %1121 }
 0x316   : > { %v1162_v43 = vadd.f32 %v1122_v53, %v2742_v62 }
 0x317   : > { %v1132_v20 = vpop.permute.xlu0 %1131 }
 0x318   : > { %v1181_v39 = vadd.f32 %v2769_v2, %v1162_v43  ;;  %v1167_v46 = vadd.f32 %v1132_v20, %v2749_v60 }
 0x31a   : > { %v1197_v17 = vmax.f32 %v1181_v39, 0.0  ;;  %v1186_v33 = vadd.f32 %v2769_v2, %v1167_v46 }
 0x31c   : > { %v1202_v0 = vmax.f32 %v1186_v33, 0.0  ;;  %1243 = vperm.xlu1 %1886, %v1197_v17   ;;  %1233 = vperm.xlu2 %1884, %v1195_v31  }
 0x31e   : > { %1268 = vperm.xlu0 %1885, %v1202_v0  }
 0x31f   : > { %v1120_v45 = vpop.permute.xlu0 %1119 }
 0x320   : > { %v1161_v62 = vadd.f32 %v1120_v45, %v2760_v49 }
 0x322   : > { %v1180_v4 = vadd.f32 %v2769_v2, %v1161_v62 }
 0x324   : > { %v1196_v54 = vmax.f32 %v1180_v4, 0.0  ;;  %1278 = vperm.xlu2 %1884, %v1204_v58  }
 0x326   : > { %1238 = vperm.xlu0 %1885, %v1196_v54  }
 0x327   : > { %v1138_v60 = vpop.permute.xlu0 %1137 }
 0x328   : > { %v1170_v28 = vadd.f32 %v1138_v60, %v2765_v47 }
 0x32a   : > { %v1189_v59 = vadd.f32 %v2769_v2, %v1170_v28 }
 0x32c   : > { %v1205_v6 = vmax.f32 %v1189_v59, 0.0 }
 0x32e   : > { %1283 = vperm.xlu0 %1885, %v1205_v6  }
 0x356   : > { %v1209_v5 = vpop.permute.xlu2 %1208 }
 0x357   : > { %v1286_v29 = vmul.f32 %v2716_v63, %v1209_v5 }
 0x359   : > { %v2807_v26 = vadd.f32 %v2773_v16, %v1286_v29 }
 0x35b   : > { %v1322_v49 = vsel %vm1321_vm0, %v2807_v26, -inf }
 0x35c   : > { %1323 = vmax.xlane.f32.xlu2 %v1322_v49 }
 0x35e   : > { %v1249_v3 = vpop.permute.xlu2 %1248 }
 0x35f   : > { %v1294_v7 = vmul.f32 %v2716_v63, %v1249_v3  ;;  %v1219_v48 = vpop.permute.xlu1 %1218 }
 0x360   : > { %v1288_v38 = vmul.f32 %v2716_v63, %v1219_v48 }
 0x361   : > { %v2813_v47 = vadd.f32 %v2773_v16, %v1294_v7 }
 0x362   : > { %v2851_v24 = vadd.f32 %v2773_v16, %v1288_v38 }
 0x363   : > { %v1346_v2 = vsel %vm1321_vm0, %v2813_v47, -inf }
 0x364   : > { %1347 = vmax.xlane.f32.xlu0 %v1346_v2  ;;  %v1328_v50 = vsel %vm1321_vm0, %v2851_v24, -inf }
 0x366   : > { %v1224_v11 = vpop.permute.xlu2 %1223 }
 0x367   : > { %v1289_v40 = vmul.f32 %v2716_v63, %v1224_v11 }
 0x369   : > { %v2845_v34 = vadd.f32 %v2773_v16, %v1289_v40 }
 0x36b   : > { %v1331_v42 = vsel %vm1321_vm0, %v2845_v34, -inf }
 0x36e   : > { %v1264_v57 = vpop.permute.xlu2 %1263  ;;  %v1214_v10 = vpop.permute.xlu0 %1213 }
 0x36f   : > { %v1287_v15 = vmul.f32 %v2716_v63, %v1214_v10  ;;  %v1297_v14 = vmul.f32 %v2716_v63, %v1264_v57 }
 0x371   : > { %v2819_v8 = vadd.f32 %v2773_v16, %v1287_v15  ;;  %v2825_v56 = vadd.f32 %v2773_v16, %v1297_v14 }
 0x373   : > { %v1325_v22 = vsel %vm1321_vm0, %v2819_v8, -inf  ;;  %v1355_v41 = vsel %vm1321_vm0, %v2825_v56, -inf }
 0x374   : > { %1326 = vmax.xlane.f32.xlu0 %v1325_v22 }
 0x376   : > { %v1259_v61 = vpop.permute.xlu1 %1258  ;;  %v1234_v1 = vpop.permute.xlu2 %1233 }
 0x377   : > { %v1296_v9 = vmul.f32 %v2716_v63, %v1259_v61  ;;  %v1254_v12 = vpop.permute.xlu0 %1253  ;;  %v1291_v44 = vmul.f32 %v2716_v63, %v1234_v1 }
 0x378   : > { %v1295_v13 = vmul.f32 %v2716_v63, %v1254_v12 }
 0x379   : > { %v2830_v35 = vadd.f32 %v2773_v16, %v1296_v9  ;;  %v2848_v25 = vadd.f32 %v2773_v16, %v1291_v44 }
 0x37a   : > { %v2833_v32 = vadd.f32 %v2773_v16, %v1295_v13 }
 0x37b   : > { %v1352_v21 = vsel %vm1321_vm0, %v2830_v35, -inf  ;;  %v1337_v19 = vsel %vm1321_vm0, %v2848_v25, -inf }
 0x37c   : > { %1353 = vmax.xlane.f32.xlu2 %v1352_v21  ;;  %1356 = vmax.xlane.f32.xlu0 %v1355_v41  ;;  %v1349_v23 = vsel %vm1321_vm0, %v2833_v32, -inf }
 0x37d   : > { %1350 = vmax.xlane.f32.xlu1 %v1349_v23 }
 0x37e   : > { %v1229_v37 = vpop.permute.xlu1 %1228  ;;  %v1279_v18 = vpop.permute.xlu2 %1278 }
 0x37f   : > { %v1290_v36 = vmul.f32 %v2716_v63, %v1229_v37  ;;  %v1300_v30 = vmul.f32 %v2716_v63, %v1279_v18 }
 0x381   : > { %v2862_v55 = vadd.f32 %v2773_v16, %v1290_v36  ;;  %v2865_v43 = vadd.f32 %v2773_v16, %v1300_v30 }
 0x383   : > { %v1334_v20 = vsel %vm1321_vm0, %v2862_v55, -inf  ;;  %v1364_v39 = vsel %vm1321_vm0, %v2865_v43, -inf }
 0x384   : > { %1332 = vmax.xlane.f32.xlu2 %v1331_v42  ;;  %1338 = vmax.xlane.f32.xlu0 %v1337_v19 }
 0x385   : > { %1329 = vmax.xlane.f32.xlu1 %v1328_v50 }
 0x386   : > { %v1274_v53 = vpop.permute.xlu1 %1273 }
 0x387   : > { %v1299_v27 = vmul.f32 %v2716_v63, %v1274_v53 }
 0x389   : > { %v2873_v46 = vadd.f32 %v2773_v16, %v1299_v27 }
 0x38b   : > { %v1361_v52 = vsel %vm1321_vm0, %v2873_v46, -inf }
 0x38c   : > { %1335 = vmax.xlane.f32.xlu2 %v1334_v20  ;;  %1365 = vmax.xlane.f32.xlu0 %v1364_v39 }
 0x38e   : > { %v1244_v31 = vpop.permute.xlu1 %1243 }
 0x38f   : > { %v1293_v33 = vmul.f32 %v2716_v63, %v1244_v31 }
 0x390   : > { %v1269_v51 = vpop.permute.xlu0 %1268 }
 0x391   : > { %v1298_v17 = vmul.f32 %v2716_v63, %v1269_v51  ;;  %v2885_v62 = vadd.f32 %v2773_v16, %v1293_v33 }
 0x393   : > { %v2878_v0 = vadd.f32 %v2773_v16, %v1298_v17  ;;  %v1343_v60 = vsel %vm1321_vm0, %v2885_v62, -inf }
 0x394   : > { %1362 = vmax.xlane.f32.xlu2 %v1361_v52 }
 0x395   : > { %v1358_v45 = vsel %vm1321_vm0, %v2878_v0, -inf }
 0x396   : > { %1359 = vmax.xlane.f32.xlu1 %v1358_v45 }
 0x398   : > { %v1239_v58 = vpop.permute.xlu0 %1238 }
 0x399   : > { %v1292_v4 = vmul.f32 %v2716_v63, %v1239_v58 }
 0x39b   : > { %v2889_v54 = vadd.f32 %v2773_v16, %v1292_v4 }
 0x39c   : > { %1344 = vmax.xlane.f32.xlu2 %v1343_v60 }
 0x39d   : > { %v1340_v28 = vsel %vm1321_vm0, %v2889_v54, -inf }
 0x39e   : > { %1341 = vmax.xlane.f32.xlu1 %v1340_v28 }
 0x3a0   : > { %v1284_v59 = vpop.permute.xlu0 %1283 }
 0x3a1   : > { %v1301_v6 = vmul.f32 %v2716_v63, %v1284_v59 }
 0x3a3   : > { %v2897_v5 = vadd.f32 %v2773_v16, %v1301_v6 }
 0x3a5   : > { %v1367_v29 = vsel %vm1321_vm0, %v2897_v5, -inf }
 0x3a6   : > { %1368 = vmax.xlane.f32.xlu1 %v1367_v29 }
 0x3cf   : > { %v1324_v49 = vpop.xlane.xlu2 %1323 }
 0x3d0   : > { %v2902_v3 = vsub.f32 %v2807_v26, %v1324_v49 }
 0x3d2   : > { %v1386_v7 = vmul.f32 1.442695, %v2902_v3 }
 0x3d4   : > { %1888 = vpow2.f32 %v1386_v7 }
 0x3d7   : > { %v1348_v2 = vpop.xlane.xlu0 %1347 }
 0x3d8   : > { %v2906_v11 = vsub.f32 %v2813_v47, %v1348_v2 }
 0x3da   : > { %v1889_v48 = vpop.eup %1888  ;;  %v1402_v63 = vmul.f32 1.442695, %v2906_v11 }
 0x3db   : > { %1434 = vrot.lane.b32.xlu2 %v1889_v48, %s2069_s27 }
 0x3dc   : > { %1890 = vpow2.f32 %v1402_v63 }
 0x3e2   : > { %v1891_v16 = vpop.eup %1890 }
 0x3e3   : > { %1450 = vrot.lane.b32.xlu1 %v1891_v16, %s2069_s27 }
 0x3e7   : > { %v1327_v57 = vpop.xlane.xlu0 %1326 }
 0x3e8   : > { %v2912_v26 = vsub.f32 %v2819_v8, %v1327_v57 }
 0x3ea   : > { %v1388_v10 = vmul.f32 1.442695, %v2912_v26 }
 0x3ec   : > { %1892 = vpow2.f32 %v1388_v10 }
 0x3ef   : > { %v1354_v15 = vpop.xlane.xlu2 %1353  ;;  %v1357_v8 = vpop.xlane.xlu0 %1356 }
 0x3f0   : > { %v2916_v47 = vsub.f32 %v2830_v35, %v1354_v15  ;;  %v1351_v14 = vpop.xlane.xlu1 %1350  ;;  %v2935_v38 = vsub.f32 %v2825_v56, %v1357_v8 }
 0x3f1   : > { %v2919_v22 = vsub.f32 %v2833_v32, %v1351_v14 }
 0x3f2   : > { %v1893_v61 = vpop.eup %1892  ;;  %v1406_v1 = vmul.f32 1.442695, %v2916_v47 }
 0x3f3   : > { %v1404_v9 = vmul.f32 1.442695, %v2919_v22  ;;  %1436 = vrot.lane.b32.xlu0 %v1893_v61, %s2069_s27 }
 0x3f4   : > { %1894 = vpow2.f32 %v1406_v1 }
 0x3f5   : > { %1896 = vpow2.f32 %v1404_v9 }
 0x3f7   : > { %v1333_v12 = vpop.xlane.xlu2 %1332  ;;  %v1339_v37 = vpop.xlane.xlu0 %1338 }
 0x3f8   : > { %v2925_v13 = vsub.f32 %v2845_v34, %v1333_v12  ;;  %v1330_v35 = vpop.xlane.xlu1 %1329  ;;  %v2945_v56 = vsub.f32 %v2848_v25, %v1339_v37 }
 0x3f9   : > { %v2928_v40 = vsub.f32 %v2851_v24, %v1330_v35  ;;  %v1408_v24 = vmul.f32 1.442695, %v2935_v38 }
 0x3fa   : > { %v1895_v32 = vpop.eup %1894  ;;  %v1392_v44 = vmul.f32 1.442695, %v2925_v13  ;;  %v1396_v50 = vmul.f32 1.442695, %v2945_v56 }
 0x3fb   : > { %v1897_v21 = vpop.eup %1896  ;;  %v1390_v41 = vmul.f32 1.442695, %v2928_v40  ;;  %1454 = vrot.lane.b32.xlu2 %v1895_v32, %s2069_s27 }
 0x3fc   : > { %1898 = vpow2.f32 %v1392_v44  ;;  %1452 = vrot.lane.b32.xlu0 %v1897_v21, %s2069_s27 }
 0x3fd   : > { %1900 = vpow2.f32 %v1390_v41 }
 0x3ff   : > { %v1336_v23 = vpop.xlane.xlu2 %1335  ;;  %v1366_v27 = vpop.xlane.xlu0 %1365 }
 0x400   : > { %v2938_v34 = vsub.f32 %v2862_v55, %v1336_v23 }
 0x402   : > { %v1899_v18 = vpop.eup %1898  ;;  %v1394_v36 = vmul.f32 1.442695, %v2938_v34 }
 0x403   : > { %v1901_v30 = vpop.eup %1900 }
 0x404   : > { %1902 = vpow2.f32 %v1394_v36  ;;  %1438 = vrot.lane.b32.xlu1 %v1901_v30, %s2069_s27  ;;  %1440 = vrot.lane.b32.xlu0 %v1899_v18, %s2069_s27 }
 0x405   : > { %1904 = vpow2.f32 %v1408_v24 }
 0x407   : > { %v1363_v42 = vpop.xlane.xlu2 %1362 }
 0x408   : > { %v2948_v19 = vsub.f32 %v2873_v46, %v1363_v42  ;;  %v2959_v46 = vsub.f32 %v2865_v43, %v1366_v27 }
 0x409   : > { %v1360_v53 = vpop.xlane.xlu1 %1359 }
 0x40a   : > { %v1903_v55 = vpop.eup %1902  ;;  %v1412_v20 = vmul.f32 1.442695, %v2948_v19  ;;  %v2953_v39 = vsub.f32 %v2878_v0, %v1360_v53  ;;  %v1414_v33 = vmul.f32 1.442695, %v2959_v46 }
 0x40b   : > { %v1905_v31 = vpop.eup %1904  ;;  %1442 = vrot.lane.b32.xlu2 %v1903_v55, %s2069_s27 }
 0x40c   : > { %1906 = vpow2.f32 %v1412_v20  ;;  %v1410_v25 = vmul.f32 1.442695, %v2953_v39  ;;  %1456 = vrot.lane.b32.xlu1 %v1905_v31, %s2069_s27 }
 0x40d   : > { %1908 = vpow2.f32 %v1396_v50 }
 0x40e   : > { %1910 = vpow2.f32 %v1410_v25 }
 0x40f   : > { %v1345_v51 = vpop.xlane.xlu2 %1344 }
 0x410   : > { %v2962_v17 = vsub.f32 %v2885_v62, %v1345_v51 }
 0x411   : > { %v1342_v0 = vpop.xlane.xlu1 %1341 }
 0x412   : > { %v1907_v52 = vpop.eup %1906  ;;  %v1400_v45 = vmul.f32 1.442695, %v2962_v17  ;;  %v2967_v58 = vsub.f32 %v2889_v54, %v1342_v0 }
 0x413   : > { %v1909_v4 = vpop.eup %1908  ;;  %1460 = vrot.lane.b32.xlu2 %v1907_v52, %s2069_s27 }
 0x414   : > { %v1911_v60 = vpop.eup %1910  ;;  %1912 = vpow2.f32 %v1400_v45  ;;  %v1398_v43 = vmul.f32 1.442695, %v2967_v58  ;;  %1444 = vrot.lane.b32.xlu1 %v1909_v4, %s2069_s27 }
 0x415   : > { %1914 = vpow2.f32 %v1414_v33  ;;  %1458 = vrot.lane.b32.xlu0 %v1911_v60, %s2069_s27 }
 0x416   : > { %1916 = vpow2.f32 %v1398_v43 }
 0x419   : > { %v1369_v62 = vpop.xlane.xlu1 %1368 }
 0x41a   : > { %v1913_v28 = vpop.eup %1912  ;;  %v2974_v59 = vsub.f32 %v2897_v5, %v1369_v62 }
 0x41b   : > { %v1915_v54 = vpop.eup %1914  ;;  %1448 = vrot.lane.b32.xlu2 %v1913_v28, %s2069_s27 }
 0x41c   : > { %v1917_v6 = vpop.eup %1916  ;;  %v1416_v29 = vmul.f32 1.442695, %v2974_v59  ;;  %1462 = vrot.lane.b32.xlu1 %v1915_v54, %s2069_s27 }
 0x41d   : > { %1446 = vrot.lane.b32.xlu0 %v1917_v6, %s2069_s27 }
 0x41e   : > { %1918 = vpow2.f32 %v1416_v29 }
 0x424   : > { %v1919_v49 = vpop.eup %1918 }
 0x425   : > { %1464 = vrot.lane.b32.xlu0 %v1919_v49, %s2069_s27 }
 0x435   : > { %v1435_v7 = vpop.permute.xlu2 %1434 }
 0x436   : > { %v1483_v2 = vsel %vm1482_vm1, %v1435_v7, 0.0 }
 0x444   : > { %1484 = vadd.xlane.f32.xlu2 %v1483_v2 }
 0x455   : > { %v1451_v5 = vpop.permute.xlu1 %1450  ;;  %v1455_v57 = vpop.permute.xlu2 %1454 }
 0x456   : > { %v1507_v48 = vsel %vm1482_vm1, %v1451_v5, 0.0  ;;  %v1513_v10 = vsel %vm1482_vm1, %v1455_v57, 0.0 }
 0x457   : > { %1508 = vadd.xlane.f32.xlu0 %v1507_v48 }
 0x465   : > { %v1437_v63 = vpop.permute.xlu0 %1436  ;;  %v1443_v14 = vpop.permute.xlu2 %1442 }
 0x466   : > { %v1486_v16 = vsel %vm1482_vm1, %v1437_v63, 0.0  ;;  %v1495_v1 = vsel %vm1482_vm1, %v1443_v14, 0.0 }
 0x467   : > { %1487 = vadd.xlane.f32.xlu1 %v1486_v16 }
 0x46d   : > { %v1461_v32 = vpop.permute.xlu2 %1460 }
 0x46e   : > { %v1453_v15 = vpop.permute.xlu0 %1452  ;;  %v1522_v44 = vsel %vm1482_vm1, %v1461_v32, 0.0 }
 0x46f   : > { %v1510_v61 = vsel %vm1482_vm1, %v1453_v15, 0.0  ;;  %1514 = vadd.xlane.f32.xlu1 %v1513_v10 }
 0x470   : > { %1511 = vadd.xlane.f32.xlu2 %v1510_v61 }
 0x475   : > { %v1449_v23 = vpop.permute.xlu2 %1448 }
 0x476   : > { %v1439_v9 = vpop.permute.xlu1 %1438  ;;  %v1441_v8 = vpop.permute.xlu0 %1440  ;;  %v1504_v37 = vsel %vm1482_vm1, %v1449_v23, 0.0 }
 0x477   : > { %v1489_v12 = vsel %vm1482_vm1, %v1439_v9, 0.0  ;;  %v1492_v35 = vsel %vm1482_vm1, %v1441_v8, 0.0  ;;  %1496 = vadd.xlane.f32.xlu1 %v1495_v1 }
 0x478   : > { %1490 = vadd.xlane.f32.xlu0 %v1489_v12  ;;  %1493 = vadd.xlane.f32.xlu2 %v1492_v35 }
 0x47e   : > { %v1457_v21 = vpop.permute.xlu1 %1456 }
 0x47f   : > { %v1516_v41 = vsel %vm1482_vm1, %v1457_v21, 0.0  ;;  %1523 = vadd.xlane.f32.xlu1 %v1522_v44 }
 0x480   : > { %1517 = vadd.xlane.f32.xlu0 %v1516_v41 }
 0x486   : > { %v1445_v24 = vpop.permute.xlu1 %1444 }
 0x487   : > { %v1498_v18 = vsel %vm1482_vm1, %v1445_v24, 0.0  ;;  %1505 = vadd.xlane.f32.xlu1 %v1504_v37  ;;  %v1459_v36 = vpop.permute.xlu0 %1458 }
 0x488   : > { %1499 = vadd.xlane.f32.xlu0 %v1498_v18  ;;  %v1519_v30 = vsel %vm1482_vm1, %v1459_v36, 0.0 }
 0x489   : > { %1520 = vadd.xlane.f32.xlu2 %v1519_v30 }
 0x48e   : > { %v1463_v42 = vpop.permute.xlu1 %1462 }
 0x48f   : > { %v1525_v50 = vsel %vm1482_vm1, %v1463_v42, 0.0  ;;  %v1447_v53 = vpop.permute.xlu0 %1446 }
 0x490   : > { %1526 = vadd.xlane.f32.xlu0 %v1525_v50  ;;  %v1501_v55 = vsel %vm1482_vm1, %v1447_v53, 0.0 }
 0x491   : > { %1502 = vadd.xlane.f32.xlu2 %v1501_v55 }
 0x497   : > { %v1465_v27 = vpop.permute.xlu0 %1464 }
 0x498   : > { %v1528_v20 = vsel %vm1482_vm1, %v1465_v27, 0.0 }
 0x499   : > { %1529 = vadd.xlane.f32.xlu2 %v1528_v20 }
 0x4b7   : > { %v1485_v31 = vpop.xlane.xlu2 %1484 }
 0x4b8   : > { %1920 = vlog2.f32 %v1485_v31 }
 0x4be   : > { %v1921_v25 = vpop.eup %1920 }
 0x4bf   : > { %v1532_v51 = vmul.f32 0.6931472, %v1921_v25 }
 0x4c1   : > { %v1563_v33 = vsub.f32 %v2902_v3, %v1532_v51 }
 0x4c3   : > { %1595 = vrot.lane.b32.xlu1 %v1563_v33, %s2069_s27 }
 0x4ca   : > { %v1509_v0 = vpop.xlane.xlu0 %1508 }
 0x4cb   : > { %1922 = vlog2.f32 %v1509_v0 }
 0x4d1   : > { %v1923_v52 = vpop.eup %1922 }
 0x4d2   : > { %v1548_v45 = vmul.f32 0.6931472, %v1923_v52 }
 0x4d4   : > { %v1571_v4 = vsub.f32 %v2906_v11, %v1548_v45 }
 0x4d6   : > { %1611 = vrot.lane.b32.xlu2 %v1571_v4, %s2069_s27 }
 0x4da   : > { %v1488_v60 = vpop.xlane.xlu1 %1487 }
 0x4db   : > { %1924 = vlog2.f32 %v1488_v60 }
 0x4e1   : > { %v1925_v43 = vpop.eup %1924 }
 0x4e2   : > { %v1534_v62 = vmul.f32 0.6931472, %v1925_v43  ;;  %v1515_v28 = vpop.xlane.xlu1 %1514 }
 0x4e3   : > { %1926 = vlog2.f32 %v1515_v28  ;;  %v1512_v54 = vpop.xlane.xlu2 %1511 }
 0x4e4   : > { %v1564_v6 = vsub.f32 %v2912_v26, %v1534_v62  ;;  %1928 = vlog2.f32 %v1512_v54 }
 0x4e6   : > { %1597 = vrot.lane.b32.xlu0 %v1564_v6, %s2069_s27 }
 0x4e9   : > { %v1927_v3 = vpop.eup %1926 }
 0x4ea   : > { %v1929_v29 = vpop.eup %1928  ;;  %v1552_v49 = vmul.f32 0.6931472, %v1927_v3  ;;  %v1497_v7 = vpop.xlane.xlu1 %1496 }
 0x4eb   : > { %v1550_v2 = vmul.f32 0.6931472, %v1929_v29  ;;  %1930 = vlog2.f32 %v1497_v7  ;;  %v1494_v11 = vpop.xlane.xlu2 %1493  ;;  %v1491_v5 = vpop.xlane.xlu0 %1490 }
 0x4ec   : > { %v1573_v48 = vsub.f32 %v2916_v47, %v1552_v49  ;;  %1932 = vlog2.f32 %v1494_v11 }
 0x4ed   : > { %v1572_v63 = vsub.f32 %v2919_v22, %v1550_v2  ;;  %1934 = vlog2.f32 %v1491_v5 }
 0x4ee   : > { %1615 = vrot.lane.b32.xlu1 %v1573_v48, %s2069_s27 }
 0x4ef   : > { %1613 = vrot.lane.b32.xlu0 %v1572_v63, %s2069_s27 }
 0x4f1   : > { %v1931_v26 = vpop.eup %1930 }
 0x4f2   : > { %v1933_v16 = vpop.eup %1932  ;;  %v1540_v57 = vmul.f32 0.6931472, %v1931_v26  ;;  %v1524_v10 = vpop.xlane.xlu1 %1523 }
 0x4f3   : > { %v1935_v15 = vpop.eup %1934  ;;  %v1538_v14 = vmul.f32 0.6931472, %v1933_v16  ;;  %v1518_v61 = vpop.xlane.xlu0 %1517 }
 0x4f4   : > { %v1567_v1 = vsub.f32 %v2938_v34, %v1540_v57  ;;  %v1536_v9 = vmul.f32 0.6931472, %v1935_v15  ;;  %1936 = vlog2.f32 %v1518_v61 }
 0x4f5   : > { %v1566_v47 = vsub.f32 %v2925_v13, %v1538_v14 }
 0x4f6   : > { %v1565_v22 = vsub.f32 %v2928_v40, %v1536_v9  ;;  %1603 = vrot.lane.b32.xlu1 %v1567_v1, %s2069_s27 }
 0x4f7   : > { %1601 = vrot.lane.b32.xlu0 %v1566_v47, %s2069_s27 }
 0x4f8   : > { %1599 = vrot.lane.b32.xlu2 %v1565_v22, %s2069_s27 }
 0x4fa   : > { %v1937_v8 = vpop.eup %1936  ;;  %v1506_v12 = vpop.xlane.xlu1 %1505 }
 0x4fb   : > { %v1554_v35 = vmul.f32 0.6931472, %v1937_v8  ;;  %1938 = vlog2.f32 %v1506_v12  ;;  %v1500_v32 = vpop.xlane.xlu0 %1499 }
 0x4fc   : > { %1940 = vlog2.f32 %v1500_v32  ;;  %v1521_v44 = vpop.xlane.xlu2 %1520 }
 0x4fd   : > { %v1574_v34 = vsub.f32 %v2935_v38, %v1554_v35  ;;  %1942 = vlog2.f32 %v1521_v44 }
 0x4fe   : > { %1944 = vlog2.f32 %v1524_v10 }
 0x500   : > { %1617 = vrot.lane.b32.xlu2 %v1574_v34, %s2069_s27 }
 0x501   : > { %v1939_v13 = vpop.eup %1938 }
 0x502   : > { %v1941_v40 = vpop.eup %1940  ;;  %v1546_v21 = vmul.f32 0.6931472, %v1939_v13 }
 0x503   : > { %v1943_v41 = vpop.eup %1942  ;;  %v1542_v23 = vmul.f32 0.6931472, %v1941_v40  ;;  %v1527_v37 = vpop.xlane.xlu0 %1526 }
 0x504   : > { %v1570_v24 = vsub.f32 %v2962_v17, %v1546_v21  ;;  %v1556_v18 = vmul.f32 0.6931472, %v1943_v41  ;;  %1946 = vlog2.f32 %v1527_v37  ;;  %v1503_v36 = vpop.xlane.xlu2 %1502  ;;  %v1945_v30 = vpop.eup %1944 }
 0x505   : > { %v1568_v42 = vsub.f32 %v2945_v56, %v1542_v23  ;;  %1948 = vlog2.f32 %v1503_v36  ;;  %v1558_v50 = vmul.f32 0.6931472, %v1945_v30 }
 0x506   : > { %v1575_v38 = vsub.f32 %v2953_v39, %v1556_v18  ;;  %1609 = vrot.lane.b32.xlu1 %v1570_v24, %s2069_s27 }
 0x507   : > { %v1576_v27 = vsub.f32 %v2948_v19, %v1558_v50 }
 0x508   : > { %1605 = vrot.lane.b32.xlu2 %v1568_v42, %s2069_s27  ;;  %1619 = vrot.lane.b32.xlu0 %v1575_v38, %s2069_s27 }
 0x50a   : > { %v1947_v53 = vpop.eup %1946 }
 0x50b   : > { %v1949_v55 = vpop.eup %1948  ;;  %v1560_v17 = vmul.f32 0.6931472, %v1947_v53 }
 0x50c   : > { %v1544_v20 = vmul.f32 0.6931472, %v1949_v55  ;;  %v1530_v31 = vpop.xlane.xlu2 %1529 }
 0x50d   : > { %v1577_v56 = vsub.f32 %v2959_v46, %v1560_v17  ;;  %1950 = vlog2.f32 %v1530_v31 }
 0x50e   : > { %v1569_v39 = vsub.f32 %v2967_v58, %v1544_v20  ;;  %1621 = vrot.lane.b32.xlu1 %v1576_v27, %s2069_s27 }
 0x510   : > { %1623 = vrot.lane.b32.xlu2 %v1577_v56, %s2069_s27  ;;  %1607 = vrot.lane.b32.xlu0 %v1569_v39, %s2069_s27 }
 0x513   : > { %v1951_v25 = vpop.eup %1950 }
 0x514   : > { %v1562_v51 = vmul.f32 0.6931472, %v1951_v25 }
 0x516   : > { %v1578_v33 = vsub.f32 %v2974_v59, %v1562_v51 }
 0x518   : > { %1625 = vrot.lane.b32.xlu0 %v1578_v33, %s2069_s27 }
 0x530   : > { %v1612_v19 = vpop.permute.xlu2 %1611 }
 0x531   : > { %1651 = vst.msk [vmem:[%s3034_s6 + $0x40] sm:$0xff] %vm1482_vm1, %v1612_v19 }
 0x535   : > { %v1596_v46 = vpop.permute.xlu1 %1595 }
 0x536   : > { %1643 = vst.msk [vmem:[%s3034_s6] sm:$0xff] %vm1482_vm1, %v1596_v46 }
 0x552   : > { %v1600_v58 = vpop.permute.xlu2 %1599 }
 0x553   : > { %1645 = vst.msk [vmem:[%s3034_s6 + $0x10] sm:$0xff] %vm1482_vm1, %v1600_v58 }
 0x558   : > { %v1598_v59 = vpop.permute.xlu0 %1597 }
 0x559   : > { %1644 = vst.msk [vmem:[%s3034_s6 + $0x8] sm:$0xff] %vm1482_vm1, %v1598_v59 }
 0x55a   : > { %v1618_v0 = vpop.permute.xlu2 %1617 }
 0x55b   : > { %1654 = vst.msk [vmem:[%s3034_s6 + $0x58] sm:$0xff] %vm1482_vm1, %v1618_v0 }
 0x560   : > { %v1616_v52 = vpop.permute.xlu1 %1615 }
 0x561   : > { %1653 = vst.msk [vmem:[%s3034_s6 + $0x50] sm:$0xff] %vm1482_vm1, %v1616_v52  ;;  %v1614_v45 = vpop.permute.xlu0 %1613 }
 0x562   : > { %v1606_v4 = vpop.permute.xlu2 %1605  ;;  %1652 = vst.msk [vmem:[%s3034_s6 + $0x48] sm:$0xff] %vm1482_vm1, %v1614_v45 }
 0x563   : > { %1648 = vst.msk [vmem:[%s3034_s6 + $0x28] sm:$0xff] %vm1482_vm1, %v1606_v4 }
 0x568   : > { %v1604_v60 = vpop.permute.xlu1 %1603 }
 0x569   : > { %1647 = vst.msk [vmem:[%s3034_s6 + $0x20] sm:$0xff] %vm1482_vm1, %v1604_v60  ;;  %v1602_v43 = vpop.permute.xlu0 %1601 }
 0x56a   : > { %v1624_v62 = vpop.permute.xlu2 %1623  ;;  %1646 = vst.msk [vmem:[%s3034_s6 + $0x18] sm:$0xff] %vm1482_vm1, %v1602_v43 }
 0x56b   : > { %1657 = vst.msk [vmem:[%s3034_s6 + $0x70] sm:$0xff] %vm1482_vm1, %v1624_v62 }
 0x578   : > { %v1610_v28 = vpop.permute.xlu1 %1609 }
 0x579   : > { %1650 = vst.msk [vmem:[%s3034_s6 + $0x38] sm:$0xff] %vm1482_vm1, %v1610_v28 }
 0x57a   : > { %v1620_v54 = vpop.permute.xlu0 %1619 }
 0x57b   : > { %1655 = vst.msk [vmem:[%s3034_s6 + $0x60] sm:$0xff] %vm1482_vm1, %v1620_v54 }
 0x580   : > { %v1622_v6 = vpop.permute.xlu1 %1621 }
 0x581   : > { %1656 = vst.msk [vmem:[%s3034_s6 + $0x68] sm:$0xff] %vm1482_vm1, %v1622_v6 }
 0x582   : > { %v1608_v3 = vpop.permute.xlu0 %1607 }
 0x583   : > { %1649 = vst.msk [vmem:[%s3034_s6 + $0x30] sm:$0xff] %vm1482_vm1, %v1608_v3 }
 0x58a   : > { %v1626_v29 = vpop.permute.xlu0 %1625 }
 0x58b   : > { %1658 = vst.msk [vmem:[%s3034_s6 + $0x78] sm:$0xff] %vm1482_vm1, %v1626_v29 }
 0x58c PF: > { %p14_p8 = scmp.ge.s32.totalorder %s2110_s17, 4   ;;  %s3090_s12 = smov %s2043_s13 }
 0x58d   : > { %s3091_s13 = smov %s2047_s14  ;;  %s3092_s14 = smov %s2120_s20 }
 0x58e   : > { %s3093_s15 = smov %s2110_s17  ;;  %16 = sbr.rel (!%p14_p8) target bundleno = 4 (0x4), region = 76 }
 0x593   :  { %1681 = vsyncpa [#allocation3], 1 }
 0x594   :  { %1683 = vsyncpa [#allocation3 + $0x1], 1 }
 0x595   :  { %1684 = vsyncpa [#allocation5], 1 }

</bundles_post_ra>
